<compile_context>
chip_gen: v7x
topology: tpu7x:2x2x1
jax: 0.10.0
libtpu: 0.0.40
codegen_flags: <defaults>
</compile_context>

<pallas_src>
import functools

import jax
import jax.numpy as jnp
from jax import lax
from jax.experimental import pallas as pl
from jax.experimental.pallas import tpu as pltpu


# ----------------------------------------------------------------------------
# Pallas kernel: full LSTM stack + MLP head in a single gridless invocation
# (all operands live in VMEM).  Layer/time loops are wavefront-interleaved and
# fully unrolled in Python (T and L are small and static).
# ----------------------------------------------------------------------------
def _make_lstm_kernel(num_layers, hidden_size, seq_len, neg_slope=0.01):
    H = hidden_size
    G = 4 * H          # packed gate width [i | f | g | o]
    T = seq_len
    L = num_layers

    def kernel(*refs):
        # refs = (x, [wih_l, whh_l, b_l] * L, wfc, bfc, wfc2, bfc2, out)
        x_ref = refs[0]                                   # [T*Bp, in_pad] bf16
        layer_refs = refs[1:1 + 3 * L]
        wfc_ref, bfc_ref, wfc2_ref, bfc2_ref = refs[1 + 3 * L: 5 + 3 * L]
        out_ref = refs[5 + 3 * L]                         # [Bp, 128] f32

        Bp = x_ref.shape[0] // T

        # Hoisted constants (JAX does not CSE broadcast/iota): g-lane mask and
        # the per-lane pre-scale implementing tanh(x) = 2*sigmoid(2x) - 1.
        lane = lax.broadcasted_iota(jnp.int32, (Bp, G), 1)
        g_lane = (lane >= 2 * H) & (lane < 3 * H)
        scale = jnp.where(g_lane, jnp.float32(2.0), jnp.float32(1.0))

        # ---- hoisted layer-0 input projection: one bf16 matmul over the
        #      whole sequence (bias folded in) -------------------------------
        xproj0 = (jnp.dot(x_ref[...], layer_refs[0][...],
                          preferred_element_type=jnp.float32)
                  + layer_refs[2][...])                    # [T*Bp, G] f32

        def cell_step(gates, c_prev):
            # One full-vreg sigmoid replaces the sigmoid+tanh pair (EUP slot).
            a = jax.nn.sigmoid(gates * scale)              # [Bp, G] f32
            act = jnp.where(g_lane, 2.0 * a - 1.0, a)      # i,f,o=sig; g=tanh
            i_g = act[:, 0:H]
            f_g = act[:, H:2 * H]
            g_g = act[:, 2 * H:3 * H]
            o_g = act[:, 3 * H:4 * H]
            c_new = f_g * c_prev + i_g * g_g               # [Bp, H] f32
            h_new = o_g * jnp.tanh(c_new)                  # [Bp, H] f32
            return h_new, c_new

        h = [jnp.zeros((Bp, H), jnp.float32) for _ in range(L)]
        c = [jnp.zeros((Bp, H), jnp.float32) for _ in range(L)]

        # ---- wavefront-interleaved recurrence: T+L-1 serial stages ----------
        for w in range(T + L - 1):
            snap = list(h)                     # layer outputs at wave start
            for l in range(L):
                t = w - l
                if not (0 <= t < T):
                    continue
                whh = layer_refs[3 * l + 1][...]           # bf16 [H, G]
                rec = jnp.dot(h[l].astype(jnp.bfloat16), whh,
                              preferred_element_type=jnp.float32)
                if l == 0:
                    inp = xproj0[t * Bp:(t + 1) * Bp, :]
                else:
                    wih = layer_refs[3 * l][...]           # bf16 [H, G]
                    b = layer_refs[3 * l + 2][...]         # f32 [1, G]
                    inp = (jnp.dot(snap[l - 1].astype(jnp.bfloat16), wih,
                                   preferred_element_type=jnp.float32) + b)
                h[l], c[l] = cell_step(rec + inp, c[l])

        # ---- head: fc -> LeakyReLU(0.01) -> fc2 -> sigmoid (lane-dense) -----
        y = (jnp.dot(h[L - 1], wfc_ref[...],
                     preferred_element_type=jnp.float32) + bfc_ref[...])
        y = jnp.where(y >= 0, y, neg_slope * y)
        z = (jnp.dot(y, wfc2_ref[...],
                     preferred_element_type=jnp.float32) + bfc2_ref[...])
        out_ref[...] = jax.nn.sigmoid(z)                   # [Bp, 128] store

    return kernel


@functools.partial(jax.jit, static_argnames=("num_layers", "hidden_size",
                                             "num_classes"))
def lstm_model_forward(x, params, *, num_layers, hidden_size, num_classes):
    """x: [B, T, input_size] float32 (batch-first, like the PyTorch module)."""
    B, T, input_size = x.shape
    H = hidden_size
    G = 4 * H
    Bp = max(8, ((B + 7) // 8) * 8)                 # pad batch to sublane tile
    IN_PAD = max(128, ((input_size + 127) // 128) * 128)
    HEAD_PAD = 128                                  # lane-dense head width
    linear_size = params["wfc"].shape[1]

    # time-major, batch-padded, lane-padded 2-D slab; bf16 MXU operand
    x_p = jnp.pad(x, ((0, Bp - B), (0, 0), (0, IN_PAD - input_size)))
    x_tm = (jnp.transpose(x_p, (1, 0, 2))
            .reshape(T * Bp, IN_PAD).astype(jnp.bfloat16))

    inputs = [x_tm]
    for l in range(num_layers):
        wih = params[f"wih{l}"]                     # [in_dim, G]
        if l == 0:
            wih = jnp.pad(wih, ((0, IN_PAD - wih.shape[0]), (0, 0)))
        inputs += [wih.astype(jnp.bfloat16),
                   params[f"whh{l}"].astype(jnp.bfloat16),
                   params[f"b{l}"]]
    # lane-dense head: zero-pad fc outputs / fc2 rows+cols to 128 lanes
    wfc = jnp.pad(params["wfc"], ((0, 0), (0, HEAD_PAD - linear_size)))
    bfc = jnp.pad(params["bfc"], ((0, 0), (0, HEAD_PAD - linear_size)))
    wfc2 = jnp.pad(params["wfc2"], ((0, HEAD_PAD - linear_size),
                                    (0, HEAD_PAD - num_classes)))
    bfc2 = jnp.pad(params["bfc2"], ((0, 0), (0, HEAD_PAD - num_classes)))
    inputs += [wfc, bfc, wfc2, bfc2]

    kernel = _make_lstm_kernel(num_layers, hidden_size, T)
    vmem = pl.BlockSpec(memory_space=pltpu.MemorySpace.VMEM)

    # VMEM limit computed from the actual footprint (plus headroom) instead of
    # a flat 16 MiB — keeps scaling on v7x's 64 MiB predictable.
    total_bytes = (sum(int(a.size) * a.dtype.itemsize for a in inputs)
                   + Bp * HEAD_PAD * 4)
    vmem_limit = 2 * total_bytes + (2 << 20)

    out = pl.pallas_call(
        kernel,
        out_shape=jax.ShapeDtypeStruct((Bp, HEAD_PAD), jnp.float32),
        in_specs=[vmem] * len(inputs),
        out_specs=vmem,
        compiler_params=pltpu.CompilerParams(vmem_limit_bytes=int(vmem_limit)),
    )(*inputs)
    return out[:B, :num_classes]


# ----------------------------------------------------------------------------
# Deterministic parameter init (PyTorch-style uniform(-1/sqrt(fan), 1/sqrt(fan)))
# Weights are stored pre-transposed for the kernel; LSTM biases combined
# (b_ih + b_hh), mathematically identical.
# ----------------------------------------------------------------------------
def init_params(key, num_classes, input_size, hidden_size, num_layers,
                linear_size=48):
    params = {}
    k = 1.0 / jnp.sqrt(hidden_size)
    for l in range(num_layers):
        in_dim = input_size if l == 0 else hidden_size
        key, k1, k2, k3, k4 = jax.random.split(key, 5)
        w_ih = jax.random.uniform(k1, (4 * hidden_size, in_dim), jnp.float32, -k, k)
        w_hh = jax.random.uniform(k2, (4 * hidden_size, hidden_size), jnp.float32, -k, k)
        b_ih = jax.random.uniform(k3, (4 * hidden_size,), jnp.float32, -k, k)
        b_hh = jax.random.uniform(k4, (4 * hidden_size,), jnp.float32, -k, k)
        params[f"wih{l}"] = w_ih.T                       # [in_dim, 4H]
        params[f"whh{l}"] = w_hh.T                       # [H, 4H]
        params[f"b{l}"] = (b_ih + b_hh)[None, :]         # [1, 4H]

    key, k1, k2, k3, k4 = jax.random.split(key, 5)
    kf = 1.0 / jnp.sqrt(hidden_size)
    w_fc = jax.random.uniform(k1, (linear_size, hidden_size), jnp.float32, -kf, kf)
    b_fc = jax.random.uniform(k2, (linear_size,), jnp.float32, -kf, kf)
    kf2 = 1.0 / jnp.sqrt(linear_size)
    w_fc2 = jax.random.uniform(k3, (num_classes, linear_size), jnp.float32, -kf2, kf2)
    b_fc2 = jax.random.uniform(k4, (num_classes,), jnp.float32, -kf2, kf2)
    params["wfc"] = w_fc.T                               # [H, linear]
    params["bfc"] = b_fc[None, :]
    params["wfc2"] = w_fc2.T                             # [linear, classes]
    params["bfc2"] = b_fc2[None, :]
    return params


# ----------------------------------------------------------------------------
# Pure-JAX reference (f32 everywhere) for correctness check
# ----------------------------------------------------------------------------
def reference_forward(x, params, *, num_layers, hidden_size):
    B, T, _ = x.shape
    H = hidden_size
    seq = x
    for l in range(num_layers):
        wih, whh, b = params[f"wih{l}"], params[f"whh{l}"], params[f"b{l}"]
        h = jnp.zeros((B, H), jnp.float32)
        c = jnp.zeros((B, H), jnp.float32)
        outs = []
        for t in range(T):
            gates = seq[:, t, :] @ wih + h @ whh + b
            i_g = jax.nn.sigmoid(gates[:, 0:H])
            f_g = jax.nn.sigmoid(gates[:, H:2 * H])
            g_g = jnp.tanh(gates[:, 2 * H:3 * H])
            o_g = jax.nn.sigmoid(gates[:, 3 * H:4 * H])
            c = f_g * c + i_g * g_g
            h = o_g * jnp.tanh(c)
            outs.append(h)
        seq = jnp.stack(outs, axis=1)
    y = seq[:, -1, :] @ params["wfc"] + params["bfc"]
    y = jnp.where(y >= 0, y, 0.01 * y)
    z = y @ params["wfc2"] + params["bfc2"]
    return jax.nn.sigmoid(z)


if __name__ == "__main__":
    # Small shapes consistent with the module's forward.
    num_classes, input_size, hidden_size, num_layers = 3, 4, 32, 2
    linear_size = 48
    B, T = 2, 8

    key = jax.random.PRNGKey(0)
    key, kx, kp = jax.random.split(key, 3)
    x = jax.random.normal(kx, (B, T, input_size), jnp.float32)
    params = init_params(kp, num_classes, input_size, hidden_size, num_layers,
                         linear_size)

    out = lstm_model_forward(x, params, num_layers=num_layers,
                             hidden_size=hidden_size, num_classes=num_classes)
    out = jax.block_until_ready(out)

    ref = reference_forward(x, params, num_layers=num_layers,
                            hidden_size=hidden_size)
    assert out.shape == (B, num_classes)
    # bf16 MXU operands in the recurrence -> loosened tolerance vs f32 reference
    assert jnp.allclose(out, ref, atol=2e-2, rtol=2e-2), (out, ref)

    print("KERNEL_OK")
</pallas_src>

<mosaic_0001>
module attributes {stable_mosaic.version = 11 : i64} {
  func.func @kernel(%arg0: memref<64x128xbf16, #tpu.memory_space<vmem>>, %arg1: memref<128x128xbf16, #tpu.memory_space<vmem>>, %arg2: memref<32x128xbf16, #tpu.memory_space<vmem>>, %arg3: memref<1x128xf32, #tpu.memory_space<vmem>>, %arg4: memref<32x128xbf16, #tpu.memory_space<vmem>>, %arg5: memref<32x128xbf16, #tpu.memory_space<vmem>>, %arg6: memref<1x128xf32, #tpu.memory_space<vmem>>, %arg7: memref<32x128xf32, #tpu.memory_space<vmem>>, %arg8: memref<1x128xf32, #tpu.memory_space<vmem>>, %arg9: memref<128x128xf32, #tpu.memory_space<vmem>>, %arg10: memref<1x128xf32, #tpu.memory_space<vmem>>, %arg11: memref<8x128xf32, #tpu.memory_space<vmem>>) attributes {dimension_semantics = [], scalar_prefetch = 0 : i64, scratch_operands = 0 : i64, tpu.core_type = #tpu.core_type<tc>} {
    %0 = tpu.iota {dimensions = array<i32: 1>} : vector<8x128xi32>
    %c64_i32 = arith.constant 64 : i32
    %1 = vector.broadcast %c64_i32 : i32 to vector<8x128xi32>
    %2 = arith.cmpi sge, %0, %1 : vector<8x128xi32>
    %c96_i32 = arith.constant 96 : i32
    %3 = vector.broadcast %c96_i32 : i32 to vector<8x128xi32>
    %4 = arith.cmpi slt, %0, %3 : vector<8x128xi32>
    %5 = arith.andi %2, %4 : vector<8x128xi1>
    %cst = arith.constant 2.000000e+00 : f32
    %cst_0 = arith.constant 1.000000e+00 : f32
    %6 = vector.broadcast %cst : f32 to vector<8x128xf32>
    %7 = vector.broadcast %cst_0 : f32 to vector<8x128xf32>
    %8 = arith.select %5, %6, %7 : vector<8x128xi1>, vector<8x128xf32>
    %c0 = arith.constant 0 : index
    %c0_1 = arith.constant 0 : index
    %9 = vector.load %arg0[%c0, %c0_1] : memref<64x128xbf16, #tpu.memory_space<vmem>>, vector<64x128xbf16>
    %c0_2 = arith.constant 0 : index
    %c0_3 = arith.constant 0 : index
    %10 = vector.load %arg1[%c0_2, %c0_3] : memref<128x128xbf16, #tpu.memory_space<vmem>>, vector<128x128xbf16>
    %cst_4 = arith.constant dense<0.000000e+00> : vector<64x128xf32>
    %11 = tpu.matmul %9, %10, %cst_4 {dimension_numbers = #tpu.dot_dimension_numbers<[1], [0], [0], [1], [0, 0, 1, 1], [], []>} : vector<64x128xbf16>, vector<128x128xbf16>, vector<64x128xf32> -> vector<64x128xf32>
    %c0_5 = arith.constant 0 : index
    %c0_6 = arith.constant 0 : index
    %12 = vector.load %arg3[%c0_5, %c0_6] : memref<1x128xf32, #tpu.memory_space<vmem>>, vector<1x128xf32>
    %13 = vector.broadcast %12 : vector<1x128xf32> to vector<64x128xf32>
    %14 = arith.addf %11, %13 : vector<64x128xf32>
    %cst_7 = arith.constant 0.000000e+00 : f32
    %15 = vector.broadcast %cst_7 : f32 to vector<8x32xf32>
    %cst_8 = arith.constant 0.000000e+00 : f32
    %16 = vector.broadcast %cst_8 : f32 to vector<8x32xf32>
    %cst_9 = arith.constant 0.000000e+00 : f32
    %17 = vector.broadcast %cst_9 : f32 to vector<8x32xf32>
    %cst_10 = arith.constant 0.000000e+00 : f32
    %18 = vector.broadcast %cst_10 : f32 to vector<8x32xf32>
    %c0_11 = arith.constant 0 : index
    %c0_12 = arith.constant 0 : index
    %19 = vector.load %arg2[%c0_11, %c0_12] : memref<32x128xbf16, #tpu.memory_space<vmem>>, vector<32x128xbf16>
    %20 = arith.truncf %15 : vector<8x32xf32> to vector<8x32xbf16>
    %cst_13 = arith.constant dense<0.000000e+00> : vector<8x128xf32>
    %21 = tpu.matmul %20, %19, %cst_13 {dimension_numbers = #tpu.dot_dimension_numbers<[1], [0], [0], [1], [0, 0, 1, 1], [], []>} : vector<8x32xbf16>, vector<32x128xbf16>, vector<8x128xf32> -> vector<8x128xf32>
    %22 = vector.extract_strided_slice %14 {offsets = [0, 0], sizes = [8, 128], strides = [1, 1]} : vector<64x128xf32> to vector<8x128xf32>
    %23 = arith.addf %21, %22 : vector<8x128xf32>
    %24 = arith.mulf %23, %8 : vector<8x128xf32>
    %25 = arith.negf %24 : vector<8x128xf32>
    %26 = math.exp %25 : vector<8x128xf32>
    %cst_14 = arith.constant 1.000000e+00 : f32
    %27 = vector.broadcast %cst_14 : f32 to vector<8x128xf32>
    %28 = arith.addf %27, %26 : vector<8x128xf32>
    %29 = arith.divf %27, %28 : vector<8x128xf32>
    %cst_15 = arith.constant 2.000000e+00 : f32
    %30 = vector.broadcast %cst_15 : f32 to vector<8x128xf32>
    %31 = arith.mulf %30, %29 : vector<8x128xf32>
    %cst_16 = arith.constant 1.000000e+00 : f32
    %32 = vector.broadcast %cst_16 : f32 to vector<8x128xf32>
    %33 = arith.subf %31, %32 : vector<8x128xf32>
    %34 = arith.select %5, %33, %29 : vector<8x128xi1>, vector<8x128xf32>
    %35 = vector.extract_strided_slice %34 {offsets = [0, 0], sizes = [8, 32], strides = [1, 1]} : vector<8x128xf32> to vector<8x32xf32>
    %36 = vector.extract_strided_slice %34 {offsets = [0, 32], sizes = [8, 32], strides = [1, 1]} : vector<8x128xf32> to vector<8x32xf32>
    %37 = vector.extract_strided_slice %34 {offsets = [0, 64], sizes = [8, 32], strides = [1, 1]} : vector<8x128xf32> to vector<8x32xf32>
    %38 = vector.extract_strided_slice %34 {offsets = [0, 96], sizes = [8, 32], strides = [1, 1]} : vector<8x128xf32> to vector<8x32xf32>
    %39 = arith.mulf %36, %17 : vector<8x32xf32>
    %40 = arith.mulf %35, %37 : vector<8x32xf32>
    %41 = arith.addf %39, %40 : vector<8x32xf32>
    %42 = math.tanh %41 : vector<8x32xf32>
    %43 = arith.mulf %38, %42 : vector<8x32xf32>
    %c0_17 = arith.constant 0 : index
    %c0_18 = arith.constant 0 : index
    %44 = vector.load %arg2[%c0_17, %c0_18] : memref<32x128xbf16, #tpu.memory_space<vmem>>, vector<32x128xbf16>
    %45 = arith.truncf %43 : vector<8x32xf32> to vector<8x32xbf16>
    %cst_19 = arith.constant dense<0.000000e+00> : vector<8x128xf32>
    %46 = tpu.matmul %45, %44, %cst_19 {dimension_numbers = #tpu.dot_dimension_numbers<[1], [0], [0], [1], [0, 0, 1, 1], [], []>} : vector<8x32xbf16>, vector<32x128xbf16>, vector<8x128xf32> -> vector<8x128xf32>
    %47 = vector.extract_strided_slice %14 {offsets = [8, 0], sizes = [8, 128], strides = [1, 1]} : vector<64x128xf32> to vector<8x128xf32>
    %48 = arith.addf %46, %47 : vector<8x128xf32>
    %49 = arith.mulf %48, %8 : vector<8x128xf32>
    %50 = arith.negf %49 : vector<8x128xf32>
    %51 = math.exp %50 : vector<8x128xf32>
    %cst_20 = arith.constant 1.000000e+00 : f32
    %52 = vector.broadcast %cst_20 : f32 to vector<8x128xf32>
    %53 = arith.addf %52, %51 : vector<8x128xf32>
    %54 = arith.divf %52, %53 : vector<8x128xf32>
    %cst_21 = arith.constant 2.000000e+00 : f32
    %55 = vector.broadcast %cst_21 : f32 to vector<8x128xf32>
    %56 = arith.mulf %55, %54 : vector<8x128xf32>
    %cst_22 = arith.constant 1.000000e+00 : f32
    %57 = vector.broadcast %cst_22 : f32 to vector<8x128xf32>
    %58 = arith.subf %56, %57 : vector<8x128xf32>
    %59 = arith.select %5, %58, %54 : vector<8x128xi1>, vector<8x128xf32>
    %60 = vector.extract_strided_slice %59 {offsets = [0, 0], sizes = [8, 32], strides = [1, 1]} : vector<8x128xf32> to vector<8x32xf32>
    %61 = vector.extract_strided_slice %59 {offsets = [0, 32], sizes = [8, 32], strides = [1, 1]} : vector<8x128xf32> to vector<8x32xf32>
    %62 = vector.extract_strided_slice %59 {offsets = [0, 64], sizes = [8, 32], strides = [1, 1]} : vector<8x128xf32> to vector<8x32xf32>
    %63 = vector.extract_strided_slice %59 {offsets = [0, 96], sizes = [8, 32], strides = [1, 1]} : vector<8x128xf32> to vector<8x32xf32>
    %64 = arith.mulf %61, %41 : vector<8x32xf32>
    %65 = arith.mulf %60, %62 : vector<8x32xf32>
    %66 = arith.addf %64, %65 : vector<8x32xf32>
    %67 = math.tanh %66 : vector<8x32xf32>
    %68 = arith.mulf %63, %67 : vector<8x32xf32>
    %c0_23 = arith.constant 0 : index
    %c0_24 = arith.constant 0 : index
    %69 = vector.load %arg5[%c0_23, %c0_24] : memref<32x128xbf16, #tpu.memory_space<vmem>>, vector<32x128xbf16>
    %70 = arith.truncf %16 : vector<8x32xf32> to vector<8x32xbf16>
    %cst_25 = arith.constant dense<0.000000e+00> : vector<8x128xf32>
    %71 = tpu.matmul %70, %69, %cst_25 {dimension_numbers = #tpu.dot_dimension_numbers<[1], [0], [0], [1], [0, 0, 1, 1], [], []>} : vector<8x32xbf16>, vector<32x128xbf16>, vector<8x128xf32> -> vector<8x128xf32>
    %c0_26 = arith.constant 0 : index
    %c0_27 = arith.constant 0 : index
    %72 = vector.load %arg4[%c0_26, %c0_27] : memref<32x128xbf16, #tpu.memory_space<vmem>>, vector<32x128xbf16>
    %c0_28 = arith.constant 0 : index
    %c0_29 = arith.constant 0 : index
    %73 = vector.load %arg6[%c0_28, %c0_29] : memref<1x128xf32, #tpu.memory_space<vmem>>, vector<1x128xf32>
    %74 = arith.truncf %43 : vector<8x32xf32> to vector<8x32xbf16>
    %cst_30 = arith.constant dense<0.000000e+00> : vector<8x128xf32>
    %75 = tpu.matmul %74, %72, %cst_30 {dimension_numbers = #tpu.dot_dimension_numbers<[1], [0], [0], [1], [0, 0, 1, 1], [], []>} : vector<8x32xbf16>, vector<32x128xbf16>, vector<8x128xf32> -> vector<8x128xf32>
    %76 = vector.broadcast %73 : vector<1x128xf32> to vector<8x128xf32>
    %77 = arith.addf %75, %76 : vector<8x128xf32>
    %78 = arith.addf %71, %77 : vector<8x128xf32>
    %79 = arith.mulf %78, %8 : vector<8x128xf32>
    %80 = arith.negf %79 : vector<8x128xf32>
    %81 = math.exp %80 : vector<8x128xf32>
    %cst_31 = arith.constant 1.000000e+00 : f32
    %82 = vector.broadcast %cst_31 : f32 to vector<8x128xf32>
    %83 = arith.addf %82, %81 : vector<8x128xf32>
    %84 = arith.divf %82, %83 : vector<8x128xf32>
    %cst_32 = arith.constant 2.000000e+00 : f32
    %85 = vector.broadcast %cst_32 : f32 to vector<8x128xf32>
    %86 = arith.mulf %85, %84 : vector<8x128xf32>
    %cst_33 = arith.constant 1.000000e+00 : f32
    %87 = vector.broadcast %cst_33 : f32 to vector<8x128xf32>
    %88 = arith.subf %86, %87 : vector<8x128xf32>
    %89 = arith.select %5, %88, %84 : vector<8x128xi1>, vector<8x128xf32>
    %90 = vector.extract_strided_slice %89 {offsets = [0, 0], sizes = [8, 32], strides = [1, 1]} : vector<8x128xf32> to vector<8x32xf32>
    %91 = vector.extract_strided_slice %89 {offsets = [0, 32], sizes = [8, 32], strides = [1, 1]} : vector<8x128xf32> to vector<8x32xf32>
    %92 = vector.extract_strided_slice %89 {offsets = [0, 64], sizes = [8, 32], strides = [1, 1]} : vector<8x128xf32> to vector<8x32xf32>
    %93 = vector.extract_strided_slice %89 {offsets = [0, 96], sizes = [8, 32], strides = [1, 1]} : vector<8x128xf32> to vector<8x32xf32>
    %94 = arith.mulf %91, %18 : vector<8x32xf32>
    %95 = arith.mulf %90, %92 : vector<8x32xf32>
    %96 = arith.addf %94, %95 : vector<8x32xf32>
    %97 = math.tanh %96 : vector<8x32xf32>
    %98 = arith.mulf %93, %97 : vector<8x32xf32>
    %c0_34 = arith.constant 0 : index
    %c0_35 = arith.constant 0 : index
    %99 = vector.load %arg2[%c0_34, %c0_35] : memref<32x128xbf16, #tpu.memory_space<vmem>>, vector<32x128xbf16>
    %100 = arith.truncf %68 : vector<8x32xf32> to vector<8x32xbf16>
    %cst_36 = arith.constant dense<0.000000e+00> : vector<8x128xf32>
    %101 = tpu.matmul %100, %99, %cst_36 {dimension_numbers = #tpu.dot_dimension_numbers<[1], [0], [0], [1], [0, 0, 1, 1], [], []>} : vector<8x32xbf16>, vector<32x128xbf16>, vector<8x128xf32> -> vector<8x128xf32>
    %102 = vector.extract_strided_slice %14 {offsets = [16, 0], sizes = [8, 128], strides = [1, 1]} : vector<64x128xf32> to vector<8x128xf32>
    %103 = arith.addf %101, %102 : vector<8x128xf32>
    %104 = arith.mulf %103, %8 : vector<8x128xf32>
    %105 = arith.negf %104 : vector<8x128xf32>
    %106 = math.exp %105 : vector<8x128xf32>
    %cst_37 = arith.constant 1.000000e+00 : f32
    %107 = vector.broadcast %cst_37 : f32 to vector<8x128xf32>
    %108 = arith.addf %107, %106 : vector<8x128xf32>
    %109 = arith.divf %107, %108 : vector<8x128xf32>
    %cst_38 = arith.constant 2.000000e+00 : f32
    %110 = vector.broadcast %cst_38 : f32 to vector<8x128xf32>
    %111 = arith.mulf %110, %109 : vector<8x128xf32>
    %cst_39 = arith.constant 1.000000e+00 : f32
    %112 = vector.broadcast %cst_39 : f32 to vector<8x128xf32>
    %113 = arith.subf %111, %112 : vector<8x128xf32>
    %114 = arith.select %5, %113, %109 : vector<8x128xi1>, vector<8x128xf32>
    %115 = vector.extract_strided_slice %114 {offsets = [0, 0], sizes = [8, 32], strides = [1, 1]} : vector<8x128xf32> to vector<8x32xf32>
    %116 = vector.extract_strided_slice %114 {offsets = [0, 32], sizes = [8, 32], strides = [1, 1]} : vector<8x128xf32> to vector<8x32xf32>
    %117 = vector.extract_strided_slice %114 {offsets = [0, 64], sizes = [8, 32], strides = [1, 1]} : vector<8x128xf32> to vector<8x32xf32>
    %118 = vector.extract_strided_slice %114 {offsets = [0, 96], sizes = [8, 32], strides = [1, 1]} : vector<8x128xf32> to vector<8x32xf32>
    %119 = arith.mulf %116, %66 : vector<8x32xf32>
    %120 = arith.mulf %115, %117 : vector<8x32xf32>
    %121 = arith.addf %119, %120 : vector<8x32xf32>
    %122 = math.tanh %121 : vector<8x32xf32>
    %123 = arith.mulf %118, %122 : vector<8x32xf32>
    %c0_40 = arith.constant 0 : index
    %c0_41 = arith.constant 0 : index
    %124 = vector.load %arg5[%c0_40, %c0_41] : memref<32x128xbf16, #tpu.memory_space<vmem>>, vector<32x128xbf16>
    %125 = arith.truncf %98 : vector<8x32xf32> to vector<8x32xbf16>
    %cst_42 = arith.constant dense<0.000000e+00> : vector<8x128xf32>
    %126 = tpu.matmul %125, %124, %cst_42 {dimension_numbers = #tpu.dot_dimension_numbers<[1], [0], [0], [1], [0, 0, 1, 1], [], []>} : vector<8x32xbf16>, vector<32x128xbf16>, vector<8x128xf32> -> vector<8x128xf32>
    %c0_43 = arith.constant 0 : index
    %c0_44 = arith.constant 0 : index
    %127 = vector.load %arg4[%c0_43, %c0_44] : memref<32x128xbf16, #tpu.memory_space<vmem>>, vector<32x128xbf16>
    %c0_45 = arith.constant 0 : index
    %c0_46 = arith.constant 0 : index
    %128 = vector.load %arg6[%c0_45, %c0_46] : memref<1x128xf32, #tpu.memory_space<vmem>>, vector<1x128xf32>
    %129 = arith.truncf %68 : vector<8x32xf32> to vector<8x32xbf16>
    %cst_47 = arith.constant dense<0.000000e+00> : vector<8x128xf32>
    %130 = tpu.matmul %129, %127, %cst_47 {dimension_numbers = #tpu.dot_dimension_numbers<[1], [0], [0], [1], [0, 0, 1, 1], [], []>} : vector<8x32xbf16>, vector<32x128xbf16>, vector<8x128xf32> -> vector<8x128xf32>
    %131 = vector.broadcast %128 : vector<1x128xf32> to vector<8x128xf32>
    %132 = arith.addf %130, %131 : vector<8x128xf32>
    %133 = arith.addf %126, %132 : vector<8x128xf32>
    %134 = arith.mulf %133, %8 : vector<8x128xf32>
    %135 = arith.negf %134 : vector<8x128xf32>
    %136 = math.exp %135 : vector<8x128xf32>
    %cst_48 = arith.constant 1.000000e+00 : f32
    %137 = vector.broadcast %cst_48 : f32 to vector<8x128xf32>
    %138 = arith.addf %137, %136 : vector<8x128xf32>
    %139 = arith.divf %137, %138 : vector<8x128xf32>
    %cst_49 = arith.constant 2.000000e+00 : f32
    %140 = vector.broadcast %cst_49 : f32 to vector<8x128xf32>
    %141 = arith.mulf %140, %139 : vector<8x128xf32>
    %cst_50 = arith.constant 1.000000e+00 : f32
    %142 = vector.broadcast %cst_50 : f32 to vector<8x128xf32>
    %143 = arith.subf %141, %142 : vector<8x128xf32>
    %144 = arith.select %5, %143, %139 : vector<8x128xi1>, vector<8x128xf32>
    %145 = vector.extract_strided_slice %144 {offsets = [0, 0], sizes = [8, 32], strides = [1, 1]} : vector<8x128xf32> to vector<8x32xf32>
    %146 = vector.extract_strided_slice %144 {offsets = [0, 32], sizes = [8, 32], strides = [1, 1]} : vector<8x128xf32> to vector<8x32xf32>
    %147 = vector.extract_strided_slice %144 {offsets = [0, 64], sizes = [8, 32], strides = [1, 1]} : vector<8x128xf32> to vector<8x32xf32>
    %148 = vector.extract_strided_slice %144 {offsets = [0, 96], sizes = [8, 32], strides = [1, 1]} : vector<8x128xf32> to vector<8x32xf32>
    %149 = arith.mulf %146, %96 : vector<8x32xf32>
    %150 = arith.mulf %145, %147 : vector<8x32xf32>
    %151 = arith.addf %149, %150 : vector<8x32xf32>
    %152 = math.tanh %151 : vector<8x32xf32>
    %153 = arith.mulf %148, %152 : vector<8x32xf32>
    %c0_51 = arith.constant 0 : index
    %c0_52 = arith.constant 0 : index
    %154 = vector.load %arg2[%c0_51, %c0_52] : memref<32x128xbf16, #tpu.memory_space<vmem>>, vector<32x128xbf16>
    %155 = arith.truncf %123 : vector<8x32xf32> to vector<8x32xbf16>
    %cst_53 = arith.constant dense<0.000000e+00> : vector<8x128xf32>
    %156 = tpu.matmul %155, %154, %cst_53 {dimension_numbers = #tpu.dot_dimension_numbers<[1], [0], [0], [1], [0, 0, 1, 1], [], []>} : vector<8x32xbf16>, vector<32x128xbf16>, vector<8x128xf32> -> vector<8x128xf32>
    %157 = vector.extract_strided_slice %14 {offsets = [24, 0], sizes = [8, 128], strides = [1, 1]} : vector<64x128xf32> to vector<8x128xf32>
    %158 = arith.addf %156, %157 : vector<8x128xf32>
    %159 = arith.mulf %158, %8 : vector<8x128xf32>
    %160 = arith.negf %159 : vector<8x128xf32>
    %161 = math.exp %160 : vector<8x128xf32>
    %cst_54 = arith.constant 1.000000e+00 : f32
    %162 = vector.broadcast %cst_54 : f32 to vector<8x128xf32>
    %163 = arith.addf %162, %161 : vector<8x128xf32>
    %164 = arith.divf %162, %163 : vector<8x128xf32>
    %cst_55 = arith.constant 2.000000e+00 : f32
    %165 = vector.broadcast %cst_55 : f32 to vector<8x128xf32>
    %166 = arith.mulf %165, %164 : vector<8x128xf32>
    %cst_56 = arith.constant 1.000000e+00 : f32
    %167 = vector.broadcast %cst_56 : f32 to vector<8x128xf32>
    %168 = arith.subf %166, %167 : vector<8x128xf32>
    %169 = arith.select %5, %168, %164 : vector<8x128xi1>, vector<8x128xf32>
    %170 = vector.extract_strided_slice %169 {offsets = [0, 0], sizes = [8, 32], strides = [1, 1]} : vector<8x128xf32> to vector<8x32xf32>
    %171 = vector.extract_strided_slice %169 {offsets = [0, 32], sizes = [8, 32], strides = [1, 1]} : vector<8x128xf32> to vector<8x32xf32>
    %172 = vector.extract_strided_slice %169 {offsets = [0, 64], sizes = [8, 32], strides = [1, 1]} : vector<8x128xf32> to vector<8x32xf32>
    %173 = vector.extract_strided_slice %169 {offsets = [0, 96], sizes = [8, 32], strides = [1, 1]} : vector<8x128xf32> to vector<8x32xf32>
    %174 = arith.mulf %171, %121 : vector<8x32xf32>
    %175 = arith.mulf %170, %172 : vector<8x32xf32>
    %176 = arith.addf %174, %175 : vector<8x32xf32>
    %177 = math.tanh %176 : vector<8x32xf32>
    %178 = arith.mulf %173, %177 : vector<8x32xf32>
    %c0_57 = arith.constant 0 : index
    %c0_58 = arith.constant 0 : index
    %179 = vector.load %arg5[%c0_57, %c0_58] : memref<32x128xbf16, #tpu.memory_space<vmem>>, vector<32x128xbf16>
    %180 = arith.truncf %153 : vector<8x32xf32> to vector<8x32xbf16>
    %cst_59 = arith.constant dense<0.000000e+00> : vector<8x128xf32>
    %181 = tpu.matmul %180, %179, %cst_59 {dimension_numbers = #tpu.dot_dimension_numbers<[1], [0], [0], [1], [0, 0, 1, 1], [], []>} : vector<8x32xbf16>, vector<32x128xbf16>, vector<8x128xf32> -> vector<8x128xf32>
    %c0_60 = arith.constant 0 : index
    %c0_61 = arith.constant 0 : index
    %182 = vector.load %arg4[%c0_60, %c0_61] : memref<32x128xbf16, #tpu.memory_space<vmem>>, vector<32x128xbf16>
    %c0_62 = arith.constant 0 : index
    %c0_63 = arith.constant 0 : index
    %183 = vector.load %arg6[%c0_62, %c0_63] : memref<1x128xf32, #tpu.memory_space<vmem>>, vector<1x128xf32>
    %184 = arith.truncf %123 : vector<8x32xf32> to vector<8x32xbf16>
    %cst_64 = arith.constant dense<0.000000e+00> : vector<8x128xf32>
    %185 = tpu.matmul %184, %182, %cst_64 {dimension_numbers = #tpu.dot_dimension_numbers<[1], [0], [0], [1], [0, 0, 1, 1], [], []>} : vector<8x32xbf16>, vector<32x128xbf16>, vector<8x128xf32> -> vector<8x128xf32>
    %186 = vector.broadcast %183 : vector<1x128xf32> to vector<8x128xf32>
    %187 = arith.addf %185, %186 : vector<8x128xf32>
    %188 = arith.addf %181, %187 : vector<8x128xf32>
    %189 = arith.mulf %188, %8 : vector<8x128xf32>
    %190 = arith.negf %189 : vector<8x128xf32>
    %191 = math.exp %190 : vector<8x128xf32>
    %cst_65 = arith.constant 1.000000e+00 : f32
    %192 = vector.broadcast %cst_65 : f32 to vector<8x128xf32>
    %193 = arith.addf %192, %191 : vector<8x128xf32>
    %194 = arith.divf %192, %193 : vector<8x128xf32>
    %cst_66 = arith.constant 2.000000e+00 : f32
    %195 = vector.broadcast %cst_66 : f32 to vector<8x128xf32>
    %196 = arith.mulf %195, %194 : vector<8x128xf32>
    %cst_67 = arith.constant 1.000000e+00 : f32
    %197 = vector.broadcast %cst_67 : f32 to vector<8x128xf32>
    %198 = arith.subf %196, %197 : vector<8x128xf32>
    %199 = arith.select %5, %198, %194 : vector<8x128xi1>, vector<8x128xf32>
    %200 = vector.extract_strided_slice %199 {offsets = [0, 0], sizes = [8, 32], strides = [1, 1]} : vector<8x128xf32> to vector<8x32xf32>
    %201 = vector.extract_strided_slice %199 {offsets = [0, 32], sizes = [8, 32], strides = [1, 1]} : vector<8x128xf32> to vector<8x32xf32>
    %202 = vector.extract_strided_slice %199 {offsets = [0, 64], sizes = [8, 32], strides = [1, 1]} : vector<8x128xf32> to vector<8x32xf32>
    %203 = vector.extract_strided_slice %199 {offsets = [0, 96], sizes = [8, 32], strides = [1, 1]} : vector<8x128xf32> to vector<8x32xf32>
    %204 = arith.mulf %201, %151 : vector<8x32xf32>
    %205 = arith.mulf %200, %202 : vector<8x32xf32>
    %206 = arith.addf %204, %205 : vector<8x32xf32>
    %207 = math.tanh %206 : vector<8x32xf32>
    %208 = arith.mulf %203, %207 : vector<8x32xf32>
    %c0_68 = arith.constant 0 : index
    %c0_69 = arith.constant 0 : index
    %209 = vector.load %arg2[%c0_68, %c0_69] : memref<32x128xbf16, #tpu.memory_space<vmem>>, vector<32x128xbf16>
    %210 = arith.truncf %178 : vector<8x32xf32> to vector<8x32xbf16>
    %cst_70 = arith.constant dense<0.000000e+00> : vector<8x128xf32>
    %211 = tpu.matmul %210, %209, %cst_70 {dimension_numbers = #tpu.dot_dimension_numbers<[1], [0], [0], [1], [0, 0, 1, 1], [], []>} : vector<8x32xbf16>, vector<32x128xbf16>, vector<8x128xf32> -> vector<8x128xf32>
    %212 = vector.extract_strided_slice %14 {offsets = [32, 0], sizes = [8, 128], strides = [1, 1]} : vector<64x128xf32> to vector<8x128xf32>
    %213 = arith.addf %211, %212 : vector<8x128xf32>
    %214 = arith.mulf %213, %8 : vector<8x128xf32>
    %215 = arith.negf %214 : vector<8x128xf32>
    %216 = math.exp %215 : vector<8x128xf32>
    %cst_71 = arith.constant 1.000000e+00 : f32
    %217 = vector.broadcast %cst_71 : f32 to vector<8x128xf32>
    %218 = arith.addf %217, %216 : vector<8x128xf32>
    %219 = arith.divf %217, %218 : vector<8x128xf32>
    %cst_72 = arith.constant 2.000000e+00 : f32
    %220 = vector.broadcast %cst_72 : f32 to vector<8x128xf32>
    %221 = arith.mulf %220, %219 : vector<8x128xf32>
    %cst_73 = arith.constant 1.000000e+00 : f32
    %222 = vector.broadcast %cst_73 : f32 to vector<8x128xf32>
    %223 = arith.subf %221, %222 : vector<8x128xf32>
    %224 = arith.select %5, %223, %219 : vector<8x128xi1>, vector<8x128xf32>
    %225 = vector.extract_strided_slice %224 {offsets = [0, 0], sizes = [8, 32], strides = [1, 1]} : vector<8x128xf32> to vector<8x32xf32>
    %226 = vector.extract_strided_slice %224 {offsets = [0, 32], sizes = [8, 32], strides = [1, 1]} : vector<8x128xf32> to vector<8x32xf32>
    %227 = vector.extract_strided_slice %224 {offsets = [0, 64], sizes = [8, 32], strides = [1, 1]} : vector<8x128xf32> to vector<8x32xf32>
    %228 = vector.extract_strided_slice %224 {offsets = [0, 96], sizes = [8, 32], strides = [1, 1]} : vector<8x128xf32> to vector<8x32xf32>
    %229 = arith.mulf %226, %176 : vector<8x32xf32>
    %230 = arith.mulf %225, %227 : vector<8x32xf32>
    %231 = arith.addf %229, %230 : vector<8x32xf32>
    %232 = math.tanh %231 : vector<8x32xf32>
    %233 = arith.mulf %228, %232 : vector<8x32xf32>
    %c0_74 = arith.constant 0 : index
    %c0_75 = arith.constant 0 : index
    %234 = vector.load %arg5[%c0_74, %c0_75] : memref<32x128xbf16, #tpu.memory_space<vmem>>, vector<32x128xbf16>
    %235 = arith.truncf %208 : vector<8x32xf32> to vector<8x32xbf16>
    %cst_76 = arith.constant dense<0.000000e+00> : vector<8x128xf32>
    %236 = tpu.matmul %235, %234, %cst_76 {dimension_numbers = #tpu.dot_dimension_numbers<[1], [0], [0], [1], [0, 0, 1, 1], [], []>} : vector<8x32xbf16>, vector<32x128xbf16>, vector<8x128xf32> -> vector<8x128xf32>
    %c0_77 = arith.constant 0 : index
    %c0_78 = arith.constant 0 : index
    %237 = vector.load %arg4[%c0_77, %c0_78] : memref<32x128xbf16, #tpu.memory_space<vmem>>, vector<32x128xbf16>
    %c0_79 = arith.constant 0 : index
    %c0_80 = arith.constant 0 : index
    %238 = vector.load %arg6[%c0_79, %c0_80] : memref<1x128xf32, #tpu.memory_space<vmem>>, vector<1x128xf32>
    %239 = arith.truncf %178 : vector<8x32xf32> to vector<8x32xbf16>
    %cst_81 = arith.constant dense<0.000000e+00> : vector<8x128xf32>
    %240 = tpu.matmul %239, %237, %cst_81 {dimension_numbers = #tpu.dot_dimension_numbers<[1], [0], [0], [1], [0, 0, 1, 1], [], []>} : vector<8x32xbf16>, vector<32x128xbf16>, vector<8x128xf32> -> vector<8x128xf32>
    %241 = vector.broadcast %238 : vector<1x128xf32> to vector<8x128xf32>
    %242 = arith.addf %240, %241 : vector<8x128xf32>
    %243 = arith.addf %236, %242 : vector<8x128xf32>
    %244 = arith.mulf %243, %8 : vector<8x128xf32>
    %245 = arith.negf %244 : vector<8x128xf32>
    %246 = math.exp %245 : vector<8x128xf32>
    %cst_82 = arith.constant 1.000000e+00 : f32
    %247 = vector.broadcast %cst_82 : f32 to vector<8x128xf32>
    %248 = arith.addf %247, %246 : vector<8x128xf32>
    %249 = arith.divf %247, %248 : vector<8x128xf32>
    %cst_83 = arith.constant 2.000000e+00 : f32
    %250 = vector.broadcast %cst_83 : f32 to vector<8x128xf32>
    %251 = arith.mulf %250, %249 : vector<8x128xf32>
    %cst_84 = arith.constant 1.000000e+00 : f32
    %252 = vector.broadcast %cst_84 : f32 to vector<8x128xf32>
    %253 = arith.subf %251, %252 : vector<8x128xf32>
    %254 = arith.select %5, %253, %249 : vector<8x128xi1>, vector<8x128xf32>
    %255 = vector.extract_strided_slice %254 {offsets = [0, 0], sizes = [8, 32], strides = [1, 1]} : vector<8x128xf32> to vector<8x32xf32>
    %256 = vector.extract_strided_slice %254 {offsets = [0, 32], sizes = [8, 32], strides = [1, 1]} : vector<8x128xf32> to vector<8x32xf32>
    %257 = vector.extract_strided_slice %254 {offsets = [0, 64], sizes = [8, 32], strides = [1, 1]} : vector<8x128xf32> to vector<8x32xf32>
    %258 = vector.extract_strided_slice %254 {offsets = [0, 96], sizes = [8, 32], strides = [1, 1]} : vector<8x128xf32> to vector<8x32xf32>
    %259 = arith.mulf %256, %206 : vector<8x32xf32>
    %260 = arith.mulf %255, %257 : vector<8x32xf32>
    %261 = arith.addf %259, %260 : vector<8x32xf32>
    %262 = math.tanh %261 : vector<8x32xf32>
    %263 = arith.mulf %258, %262 : vector<8x32xf32>
    %c0_85 = arith.constant 0 : index
    %c0_86 = arith.constant 0 : index
    %264 = vector.load %arg2[%c0_85, %c0_86] : memref<32x128xbf16, #tpu.memory_space<vmem>>, vector<32x128xbf16>
    %265 = arith.truncf %233 : vector<8x32xf32> to vector<8x32xbf16>
    %cst_87 = arith.constant dense<0.000000e+00> : vector<8x128xf32>
    %266 = tpu.matmul %265, %264, %cst_87 {dimension_numbers = #tpu.dot_dimension_numbers<[1], [0], [0], [1], [0, 0, 1, 1], [], []>} : vector<8x32xbf16>, vector<32x128xbf16>, vector<8x128xf32> -> vector<8x128xf32>
    %267 = vector.extract_strided_slice %14 {offsets = [40, 0], sizes = [8, 128], strides = [1, 1]} : vector<64x128xf32> to vector<8x128xf32>
    %268 = arith.addf %266, %267 : vector<8x128xf32>
    %269 = arith.mulf %268, %8 : vector<8x128xf32>
    %270 = arith.negf %269 : vector<8x128xf32>
    %271 = math.exp %270 : vector<8x128xf32>
    %cst_88 = arith.constant 1.000000e+00 : f32
    %272 = vector.broadcast %cst_88 : f32 to vector<8x128xf32>
    %273 = arith.addf %272, %271 : vector<8x128xf32>
    %274 = arith.divf %272, %273 : vector<8x128xf32>
    %cst_89 = arith.constant 2.000000e+00 : f32
    %275 = vector.broadcast %cst_89 : f32 to vector<8x128xf32>
    %276 = arith.mulf %275, %274 : vector<8x128xf32>
    %cst_90 = arith.constant 1.000000e+00 : f32
    %277 = vector.broadcast %cst_90 : f32 to vector<8x128xf32>
    %278 = arith.subf %276, %277 : vector<8x128xf32>
    %279 = arith.select %5, %278, %274 : vector<8x128xi1>, vector<8x128xf32>
    %280 = vector.extract_strided_slice %279 {offsets = [0, 0], sizes = [8, 32], strides = [1, 1]} : vector<8x128xf32> to vector<8x32xf32>
    %281 = vector.extract_strided_slice %279 {offsets = [0, 32], sizes = [8, 32], strides = [1, 1]} : vector<8x128xf32> to vector<8x32xf32>
    %282 = vector.extract_strided_slice %279 {offsets = [0, 64], sizes = [8, 32], strides = [1, 1]} : vector<8x128xf32> to vector<8x32xf32>
    %283 = vector.extract_strided_slice %279 {offsets = [0, 96], sizes = [8, 32], strides = [1, 1]} : vector<8x128xf32> to vector<8x32xf32>
    %284 = arith.mulf %281, %231 : vector<8x32xf32>
    %285 = arith.mulf %280, %282 : vector<8x32xf32>
    %286 = arith.addf %284, %285 : vector<8x32xf32>
    %287 = math.tanh %286 : vector<8x32xf32>
    %288 = arith.mulf %283, %287 : vector<8x32xf32>
    %c0_91 = arith.constant 0 : index
    %c0_92 = arith.constant 0 : index
    %289 = vector.load %arg5[%c0_91, %c0_92] : memref<32x128xbf16, #tpu.memory_space<vmem>>, vector<32x128xbf16>
    %290 = arith.truncf %263 : vector<8x32xf32> to vector<8x32xbf16>
    %cst_93 = arith.constant dense<0.000000e+00> : vector<8x128xf32>
    %291 = tpu.matmul %290, %289, %cst_93 {dimension_numbers = #tpu.dot_dimension_numbers<[1], [0], [0], [1], [0, 0, 1, 1], [], []>} : vector<8x32xbf16>, vector<32x128xbf16>, vector<8x128xf32> -> vector<8x128xf32>
    %c0_94 = arith.constant 0 : index
    %c0_95 = arith.constant 0 : index
    %292 = vector.load %arg4[%c0_94, %c0_95] : memref<32x128xbf16, #tpu.memory_space<vmem>>, vector<32x128xbf16>
    %c0_96 = arith.constant 0 : index
    %c0_97 = arith.constant 0 : index
    %293 = vector.load %arg6[%c0_96, %c0_97] : memref<1x128xf32, #tpu.memory_space<vmem>>, vector<1x128xf32>
    %294 = arith.truncf %233 : vector<8x32xf32> to vector<8x32xbf16>
    %cst_98 = arith.constant dense<0.000000e+00> : vector<8x128xf32>
    %295 = tpu.matmul %294, %292, %cst_98 {dimension_numbers = #tpu.dot_dimension_numbers<[1], [0], [0], [1], [0, 0, 1, 1], [], []>} : vector<8x32xbf16>, vector<32x128xbf16>, vector<8x128xf32> -> vector<8x128xf32>
    %296 = vector.broadcast %293 : vector<1x128xf32> to vector<8x128xf32>
    %297 = arith.addf %295, %296 : vector<8x128xf32>
    %298 = arith.addf %291, %297 : vector<8x128xf32>
    %299 = arith.mulf %298, %8 : vector<8x128xf32>
    %300 = arith.negf %299 : vector<8x128xf32>
    %301 = math.exp %300 : vector<8x128xf32>
    %cst_99 = arith.constant 1.000000e+00 : f32
    %302 = vector.broadcast %cst_99 : f32 to vector<8x128xf32>
    %303 = arith.addf %302, %301 : vector<8x128xf32>
    %304 = arith.divf %302, %303 : vector<8x128xf32>
    %cst_100 = arith.constant 2.000000e+00 : f32
    %305 = vector.broadcast %cst_100 : f32 to vector<8x128xf32>
    %306 = arith.mulf %305, %304 : vector<8x128xf32>
    %cst_101 = arith.constant 1.000000e+00 : f32
    %307 = vector.broadcast %cst_101 : f32 to vector<8x128xf32>
    %308 = arith.subf %306, %307 : vector<8x128xf32>
    %309 = arith.select %5, %308, %304 : vector<8x128xi1>, vector<8x128xf32>
    %310 = vector.extract_strided_slice %309 {offsets = [0, 0], sizes = [8, 32], strides = [1, 1]} : vector<8x128xf32> to vector<8x32xf32>
    %311 = vector.extract_strided_slice %309 {offsets = [0, 32], sizes = [8, 32], strides = [1, 1]} : vector<8x128xf32> to vector<8x32xf32>
    %312 = vector.extract_strided_slice %309 {offsets = [0, 64], sizes = [8, 32], strides = [1, 1]} : vector<8x128xf32> to vector<8x32xf32>
    %313 = vector.extract_strided_slice %309 {offsets = [0, 96], sizes = [8, 32], strides = [1, 1]} : vector<8x128xf32> to vector<8x32xf32>
    %314 = arith.mulf %311, %261 : vector<8x32xf32>
    %315 = arith.mulf %310, %312 : vector<8x32xf32>
    %316 = arith.addf %314, %315 : vector<8x32xf32>
    %317 = math.tanh %316 : vector<8x32xf32>
    %318 = arith.mulf %313, %317 : vector<8x32xf32>
    %c0_102 = arith.constant 0 : index
    %c0_103 = arith.constant 0 : index
    %319 = vector.load %arg2[%c0_102, %c0_103] : memref<32x128xbf16, #tpu.memory_space<vmem>>, vector<32x128xbf16>
    %320 = arith.truncf %288 : vector<8x32xf32> to vector<8x32xbf16>
    %cst_104 = arith.constant dense<0.000000e+00> : vector<8x128xf32>
    %321 = tpu.matmul %320, %319, %cst_104 {dimension_numbers = #tpu.dot_dimension_numbers<[1], [0], [0], [1], [0, 0, 1, 1], [], []>} : vector<8x32xbf16>, vector<32x128xbf16>, vector<8x128xf32> -> vector<8x128xf32>
    %322 = vector.extract_strided_slice %14 {offsets = [48, 0], sizes = [8, 128], strides = [1, 1]} : vector<64x128xf32> to vector<8x128xf32>
    %323 = arith.addf %321, %322 : vector<8x128xf32>
    %324 = arith.mulf %323, %8 : vector<8x128xf32>
    %325 = arith.negf %324 : vector<8x128xf32>
    %326 = math.exp %325 : vector<8x128xf32>
    %cst_105 = arith.constant 1.000000e+00 : f32
    %327 = vector.broadcast %cst_105 : f32 to vector<8x128xf32>
    %328 = arith.addf %327, %326 : vector<8x128xf32>
    %329 = arith.divf %327, %328 : vector<8x128xf32>
    %cst_106 = arith.constant 2.000000e+00 : f32
    %330 = vector.broadcast %cst_106 : f32 to vector<8x128xf32>
    %331 = arith.mulf %330, %329 : vector<8x128xf32>
    %cst_107 = arith.constant 1.000000e+00 : f32
    %332 = vector.broadcast %cst_107 : f32 to vector<8x128xf32>
    %333 = arith.subf %331, %332 : vector<8x128xf32>
    %334 = arith.select %5, %333, %329 : vector<8x128xi1>, vector<8x128xf32>
    %335 = vector.extract_strided_slice %334 {offsets = [0, 0], sizes = [8, 32], strides = [1, 1]} : vector<8x128xf32> to vector<8x32xf32>
    %336 = vector.extract_strided_slice %334 {offsets = [0, 32], sizes = [8, 32], strides = [1, 1]} : vector<8x128xf32> to vector<8x32xf32>
    %337 = vector.extract_strided_slice %334 {offsets = [0, 64], sizes = [8, 32], strides = [1, 1]} : vector<8x128xf32> to vector<8x32xf32>
    %338 = vector.extract_strided_slice %334 {offsets = [0, 96], sizes = [8, 32], strides = [1, 1]} : vector<8x128xf32> to vector<8x32xf32>
    %339 = arith.mulf %336, %286 : vector<8x32xf32>
    %340 = arith.mulf %335, %337 : vector<8x32xf32>
    %341 = arith.addf %339, %340 : vector<8x32xf32>
    %342 = math.tanh %341 : vector<8x32xf32>
    %343 = arith.mulf %338, %342 : vector<8x32xf32>
    %c0_108 = arith.constant 0 : index
    %c0_109 = arith.constant 0 : index
    %344 = vector.load %arg5[%c0_108, %c0_109] : memref<32x128xbf16, #tpu.memory_space<vmem>>, vector<32x128xbf16>
    %345 = arith.truncf %318 : vector<8x32xf32> to vector<8x32xbf16>
    %cst_110 = arith.constant dense<0.000000e+00> : vector<8x128xf32>
    %346 = tpu.matmul %345, %344, %cst_110 {dimension_numbers = #tpu.dot_dimension_numbers<[1], [0], [0], [1], [0, 0, 1, 1], [], []>} : vector<8x32xbf16>, vector<32x128xbf16>, vector<8x128xf32> -> vector<8x128xf32>
    %c0_111 = arith.constant 0 : index
    %c0_112 = arith.constant 0 : index
    %347 = vector.load %arg4[%c0_111, %c0_112] : memref<32x128xbf16, #tpu.memory_space<vmem>>, vector<32x128xbf16>
    %c0_113 = arith.constant 0 : index
    %c0_114 = arith.constant 0 : index
    %348 = vector.load %arg6[%c0_113, %c0_114] : memref<1x128xf32, #tpu.memory_space<vmem>>, vector<1x128xf32>
    %349 = arith.truncf %288 : vector<8x32xf32> to vector<8x32xbf16>
    %cst_115 = arith.constant dense<0.000000e+00> : vector<8x128xf32>
    %350 = tpu.matmul %349, %347, %cst_115 {dimension_numbers = #tpu.dot_dimension_numbers<[1], [0], [0], [1], [0, 0, 1, 1], [], []>} : vector<8x32xbf16>, vector<32x128xbf16>, vector<8x128xf32> -> vector<8x128xf32>
    %351 = vector.broadcast %348 : vector<1x128xf32> to vector<8x128xf32>
    %352 = arith.addf %350, %351 : vector<8x128xf32>
    %353 = arith.addf %346, %352 : vector<8x128xf32>
    %354 = arith.mulf %353, %8 : vector<8x128xf32>
    %355 = arith.negf %354 : vector<8x128xf32>
    %356 = math.exp %355 : vector<8x128xf32>
    %cst_116 = arith.constant 1.000000e+00 : f32
    %357 = vector.broadcast %cst_116 : f32 to vector<8x128xf32>
    %358 = arith.addf %357, %356 : vector<8x128xf32>
    %359 = arith.divf %357, %358 : vector<8x128xf32>
    %cst_117 = arith.constant 2.000000e+00 : f32
    %360 = vector.broadcast %cst_117 : f32 to vector<8x128xf32>
    %361 = arith.mulf %360, %359 : vector<8x128xf32>
    %cst_118 = arith.constant 1.000000e+00 : f32
    %362 = vector.broadcast %cst_118 : f32 to vector<8x128xf32>
    %363 = arith.subf %361, %362 : vector<8x128xf32>
    %364 = arith.select %5, %363, %359 : vector<8x128xi1>, vector<8x128xf32>
    %365 = vector.extract_strided_slice %364 {offsets = [0, 0], sizes = [8, 32], strides = [1, 1]} : vector<8x128xf32> to vector<8x32xf32>
    %366 = vector.extract_strided_slice %364 {offsets = [0, 32], sizes = [8, 32], strides = [1, 1]} : vector<8x128xf32> to vector<8x32xf32>
    %367 = vector.extract_strided_slice %364 {offsets = [0, 64], sizes = [8, 32], strides = [1, 1]} : vector<8x128xf32> to vector<8x32xf32>
    %368 = vector.extract_strided_slice %364 {offsets = [0, 96], sizes = [8, 32], strides = [1, 1]} : vector<8x128xf32> to vector<8x32xf32>
    %369 = arith.mulf %366, %316 : vector<8x32xf32>
    %370 = arith.mulf %365, %367 : vector<8x32xf32>
    %371 = arith.addf %369, %370 : vector<8x32xf32>
    %372 = math.tanh %371 : vector<8x32xf32>
    %373 = arith.mulf %368, %372 : vector<8x32xf32>
    %c0_119 = arith.constant 0 : index
    %c0_120 = arith.constant 0 : index
    %374 = vector.load %arg2[%c0_119, %c0_120] : memref<32x128xbf16, #tpu.memory_space<vmem>>, vector<32x128xbf16>
    %375 = arith.truncf %343 : vector<8x32xf32> to vector<8x32xbf16>
    %cst_121 = arith.constant dense<0.000000e+00> : vector<8x128xf32>
    %376 = tpu.matmul %375, %374, %cst_121 {dimension_numbers = #tpu.dot_dimension_numbers<[1], [0], [0], [1], [0, 0, 1, 1], [], []>} : vector<8x32xbf16>, vector<32x128xbf16>, vector<8x128xf32> -> vector<8x128xf32>
    %377 = vector.extract_strided_slice %14 {offsets = [56, 0], sizes = [8, 128], strides = [1, 1]} : vector<64x128xf32> to vector<8x128xf32>
    %378 = arith.addf %376, %377 : vector<8x128xf32>
    %379 = arith.mulf %378, %8 : vector<8x128xf32>
    %380 = arith.negf %379 : vector<8x128xf32>
    %381 = math.exp %380 : vector<8x128xf32>
    %cst_122 = arith.constant 1.000000e+00 : f32
    %382 = vector.broadcast %cst_122 : f32 to vector<8x128xf32>
    %383 = arith.addf %382, %381 : vector<8x128xf32>
    %384 = arith.divf %382, %383 : vector<8x128xf32>
    %cst_123 = arith.constant 2.000000e+00 : f32
    %385 = vector.broadcast %cst_123 : f32 to vector<8x128xf32>
    %386 = arith.mulf %385, %384 : vector<8x128xf32>
    %cst_124 = arith.constant 1.000000e+00 : f32
    %387 = vector.broadcast %cst_124 : f32 to vector<8x128xf32>
    %388 = arith.subf %386, %387 : vector<8x128xf32>
    %389 = arith.select %5, %388, %384 : vector<8x128xi1>, vector<8x128xf32>
    %390 = vector.extract_strided_slice %389 {offsets = [0, 0], sizes = [8, 32], strides = [1, 1]} : vector<8x128xf32> to vector<8x32xf32>
    %391 = vector.extract_strided_slice %389 {offsets = [0, 32], sizes = [8, 32], strides = [1, 1]} : vector<8x128xf32> to vector<8x32xf32>
    %392 = vector.extract_strided_slice %389 {offsets = [0, 64], sizes = [8, 32], strides = [1, 1]} : vector<8x128xf32> to vector<8x32xf32>
    %393 = vector.extract_strided_slice %389 {offsets = [0, 96], sizes = [8, 32], strides = [1, 1]} : vector<8x128xf32> to vector<8x32xf32>
    %394 = arith.mulf %391, %341 : vector<8x32xf32>
    %395 = arith.mulf %390, %392 : vector<8x32xf32>
    %396 = arith.addf %394, %395 : vector<8x32xf32>
    %397 = math.tanh %396 : vector<8x32xf32>
    %398 = arith.mulf %393, %397 : vector<8x32xf32>
    %c0_125 = arith.constant 0 : index
    %c0_126 = arith.constant 0 : index
    %399 = vector.load %arg5[%c0_125, %c0_126] : memref<32x128xbf16, #tpu.memory_space<vmem>>, vector<32x128xbf16>
    %400 = arith.truncf %373 : vector<8x32xf32> to vector<8x32xbf16>
    %cst_127 = arith.constant dense<0.000000e+00> : vector<8x128xf32>
    %401 = tpu.matmul %400, %399, %cst_127 {dimension_numbers = #tpu.dot_dimension_numbers<[1], [0], [0], [1], [0, 0, 1, 1], [], []>} : vector<8x32xbf16>, vector<32x128xbf16>, vector<8x128xf32> -> vector<8x128xf32>
    %c0_128 = arith.constant 0 : index
    %c0_129 = arith.constant 0 : index
    %402 = vector.load %arg4[%c0_128, %c0_129] : memref<32x128xbf16, #tpu.memory_space<vmem>>, vector<32x128xbf16>
    %c0_130 = arith.constant 0 : index
    %c0_131 = arith.constant 0 : index
    %403 = vector.load %arg6[%c0_130, %c0_131] : memref<1x128xf32, #tpu.memory_space<vmem>>, vector<1x128xf32>
    %404 = arith.truncf %343 : vector<8x32xf32> to vector<8x32xbf16>
    %cst_132 = arith.constant dense<0.000000e+00> : vector<8x128xf32>
    %405 = tpu.matmul %404, %402, %cst_132 {dimension_numbers = #tpu.dot_dimension_numbers<[1], [0], [0], [1], [0, 0, 1, 1], [], []>} : vector<8x32xbf16>, vector<32x128xbf16>, vector<8x128xf32> -> vector<8x128xf32>
    %406 = vector.broadcast %403 : vector<1x128xf32> to vector<8x128xf32>
    %407 = arith.addf %405, %406 : vector<8x128xf32>
    %408 = arith.addf %401, %407 : vector<8x128xf32>
    %409 = arith.mulf %408, %8 : vector<8x128xf32>
    %410 = arith.negf %409 : vector<8x128xf32>
    %411 = math.exp %410 : vector<8x128xf32>
    %cst_133 = arith.constant 1.000000e+00 : f32
    %412 = vector.broadcast %cst_133 : f32 to vector<8x128xf32>
    %413 = arith.addf %412, %411 : vector<8x128xf32>
    %414 = arith.divf %412, %413 : vector<8x128xf32>
    %cst_134 = arith.constant 2.000000e+00 : f32
    %415 = vector.broadcast %cst_134 : f32 to vector<8x128xf32>
    %416 = arith.mulf %415, %414 : vector<8x128xf32>
    %cst_135 = arith.constant 1.000000e+00 : f32
    %417 = vector.broadcast %cst_135 : f32 to vector<8x128xf32>
    %418 = arith.subf %416, %417 : vector<8x128xf32>
    %419 = arith.select %5, %418, %414 : vector<8x128xi1>, vector<8x128xf32>
    %420 = vector.extract_strided_slice %419 {offsets = [0, 0], sizes = [8, 32], strides = [1, 1]} : vector<8x128xf32> to vector<8x32xf32>
    %421 = vector.extract_strided_slice %419 {offsets = [0, 32], sizes = [8, 32], strides = [1, 1]} : vector<8x128xf32> to vector<8x32xf32>
    %422 = vector.extract_strided_slice %419 {offsets = [0, 64], sizes = [8, 32], strides = [1, 1]} : vector<8x128xf32> to vector<8x32xf32>
    %423 = vector.extract_strided_slice %419 {offsets = [0, 96], sizes = [8, 32], strides = [1, 1]} : vector<8x128xf32> to vector<8x32xf32>
    %424 = arith.mulf %421, %371 : vector<8x32xf32>
    %425 = arith.mulf %420, %422 : vector<8x32xf32>
    %426 = arith.addf %424, %425 : vector<8x32xf32>
    %427 = math.tanh %426 : vector<8x32xf32>
    %428 = arith.mulf %423, %427 : vector<8x32xf32>
    %c0_136 = arith.constant 0 : index
    %c0_137 = arith.constant 0 : index
    %429 = vector.load %arg5[%c0_136, %c0_137] : memref<32x128xbf16, #tpu.memory_space<vmem>>, vector<32x128xbf16>
    %430 = arith.truncf %428 : vector<8x32xf32> to vector<8x32xbf16>
    %cst_138 = arith.constant dense<0.000000e+00> : vector<8x128xf32>
    %431 = tpu.matmul %430, %429, %cst_138 {dimension_numbers = #tpu.dot_dimension_numbers<[1], [0], [0], [1], [0, 0, 1, 1], [], []>} : vector<8x32xbf16>, vector<32x128xbf16>, vector<8x128xf32> -> vector<8x128xf32>
    %c0_139 = arith.constant 0 : index
    %c0_140 = arith.constant 0 : index
    %432 = vector.load %arg4[%c0_139, %c0_140] : memref<32x128xbf16, #tpu.memory_space<vmem>>, vector<32x128xbf16>
    %c0_141 = arith.constant 0 : index
    %c0_142 = arith.constant 0 : index
    %433 = vector.load %arg6[%c0_141, %c0_142] : memref<1x128xf32, #tpu.memory_space<vmem>>, vector<1x128xf32>
    %434 = arith.truncf %398 : vector<8x32xf32> to vector<8x32xbf16>
    %cst_143 = arith.constant dense<0.000000e+00> : vector<8x128xf32>
    %435 = tpu.matmul %434, %432, %cst_143 {dimension_numbers = #tpu.dot_dimension_numbers<[1], [0], [0], [1], [0, 0, 1, 1], [], []>} : vector<8x32xbf16>, vector<32x128xbf16>, vector<8x128xf32> -> vector<8x128xf32>
    %436 = vector.broadcast %433 : vector<1x128xf32> to vector<8x128xf32>
    %437 = arith.addf %435, %436 : vector<8x128xf32>
    %438 = arith.addf %431, %437 : vector<8x128xf32>
    %439 = arith.mulf %438, %8 : vector<8x128xf32>
    %440 = arith.negf %439 : vector<8x128xf32>
    %441 = math.exp %440 : vector<8x128xf32>
    %cst_144 = arith.constant 1.000000e+00 : f32
    %442 = vector.broadcast %cst_144 : f32 to vector<8x128xf32>
    %443 = arith.addf %442, %441 : vector<8x128xf32>
    %444 = arith.divf %442, %443 : vector<8x128xf32>
    %cst_145 = arith.constant 2.000000e+00 : f32
    %445 = vector.broadcast %cst_145 : f32 to vector<8x128xf32>
    %446 = arith.mulf %445, %444 : vector<8x128xf32>
    %cst_146 = arith.constant 1.000000e+00 : f32
    %447 = vector.broadcast %cst_146 : f32 to vector<8x128xf32>
    %448 = arith.subf %446, %447 : vector<8x128xf32>
    %449 = arith.select %5, %448, %444 : vector<8x128xi1>, vector<8x128xf32>
    %450 = vector.extract_strided_slice %449 {offsets = [0, 0], sizes = [8, 32], strides = [1, 1]} : vector<8x128xf32> to vector<8x32xf32>
    %451 = vector.extract_strided_slice %449 {offsets = [0, 32], sizes = [8, 32], strides = [1, 1]} : vector<8x128xf32> to vector<8x32xf32>
    %452 = vector.extract_strided_slice %449 {offsets = [0, 64], sizes = [8, 32], strides = [1, 1]} : vector<8x128xf32> to vector<8x32xf32>
    %453 = vector.extract_strided_slice %449 {offsets = [0, 96], sizes = [8, 32], strides = [1, 1]} : vector<8x128xf32> to vector<8x32xf32>
    %454 = arith.mulf %451, %426 : vector<8x32xf32>
    %455 = arith.mulf %450, %452 : vector<8x32xf32>
    %456 = arith.addf %454, %455 : vector<8x32xf32>
    %457 = math.tanh %456 : vector<8x32xf32>
    %458 = arith.mulf %453, %457 : vector<8x32xf32>
    %c0_147 = arith.constant 0 : index
    %c0_148 = arith.constant 0 : index
    %459 = vector.load %arg7[%c0_147, %c0_148] : memref<32x128xf32, #tpu.memory_space<vmem>>, vector<32x128xf32>
    %cst_149 = arith.constant dense<0.000000e+00> : vector<8x128xf32>
    %460 = tpu.matmul %458, %459, %cst_149 {dimension_numbers = #tpu.dot_dimension_numbers<[1], [0], [0], [1], [0, 0, 1, 1], [], []>} : vector<8x32xf32>, vector<32x128xf32>, vector<8x128xf32> -> vector<8x128xf32>
    %c0_150 = arith.constant 0 : index
    %c0_151 = arith.constant 0 : index
    %461 = vector.load %arg8[%c0_150, %c0_151] : memref<1x128xf32, #tpu.memory_space<vmem>>, vector<1x128xf32>
    %462 = vector.broadcast %461 : vector<1x128xf32> to vector<8x128xf32>
    %463 = arith.addf %460, %462 : vector<8x128xf32>
    %cst_152 = arith.constant 0.000000e+00 : f32
    %464 = vector.broadcast %cst_152 : f32 to vector<8x128xf32>
    %465 = arith.cmpf oge, %463, %464 : vector<8x128xf32>
    %cst_153 = arith.constant 0.00999999977 : f32
    %466 = vector.broadcast %cst_153 : f32 to vector<8x128xf32>
    %467 = arith.mulf %466, %463 : vector<8x128xf32>
    %468 = arith.select %465, %463, %467 : vector<8x128xi1>, vector<8x128xf32>
    %c0_154 = arith.constant 0 : index
    %c0_155 = arith.constant 0 : index
    %469 = vector.load %arg9[%c0_154, %c0_155] : memref<128x128xf32, #tpu.memory_space<vmem>>, vector<128x128xf32>
    %cst_156 = arith.constant dense<0.000000e+00> : vector<8x128xf32>
    %470 = tpu.matmul %468, %469, %cst_156 {dimension_numbers = #tpu.dot_dimension_numbers<[1], [0], [0], [1], [0, 0, 1, 1], [], []>} : vector<8x128xf32>, vector<128x128xf32>, vector<8x128xf32> -> vector<8x128xf32>
    %c0_157 = arith.constant 0 : index
    %c0_158 = arith.constant 0 : index
    %471 = vector.load %arg10[%c0_157, %c0_158] : memref<1x128xf32, #tpu.memory_space<vmem>>, vector<1x128xf32>
    %472 = vector.broadcast %471 : vector<1x128xf32> to vector<8x128xf32>
    %473 = arith.addf %470, %472 : vector<8x128xf32>
    %474 = arith.negf %473 : vector<8x128xf32>
    %475 = math.exp %474 : vector<8x128xf32>
    %cst_159 = arith.constant 1.000000e+00 : f32
    %476 = vector.broadcast %cst_159 : f32 to vector<8x128xf32>
    %477 = arith.addf %476, %475 : vector<8x128xf32>
    %478 = arith.divf %476, %477 : vector<8x128xf32>
    %c0_160 = arith.constant 0 : index
    %c0_161 = arith.constant 0 : index
    %479 = vector.load %arg11[%c0_160, %c0_161] : memref<8x128xf32, #tpu.memory_space<vmem>>, vector<8x128xf32>
    tpu.vector_store %arg11[%c0_160, %c0_161], %478 {strides = array<i32>} : memref<8x128xf32, #tpu.memory_space<vmem>>, vector<8x128xf32>,
    return
  }
}

</mosaic_0001>

<bundles_post_ra>
// kernel: lstm_model_forward.1
= control target key start
LH: loop header
LB: loop body
LE: loop exit
PB: predicated region body
PF: predicated region fallthrough
CT: control target
= control target key end

     0   :  { %v2607_v1 = vmov 0.0   ;;  %vm2608_vm0 = vmmov 0   ;;  %v2609_v10 = vmov 0   ;;  %v39_v18 = vlaneseq  ;;  %s2611_s22 = smov 64   ;;  %s2612_s23 = smov 32   ;;  %s3203_s1 = inlined_call_operand.vmem [shape: bf16[128,128], index: 1, kind: input, shape index: {}]   ;;  %s3204_s2 = inlined_call_operand.vmem [shape: bf16[32,128], index: 2, kind: input, shape index: {}]   ;;  %s3205_s0 = inlined_call_operand.vmem [shape: bf16[64,128], index: 0, kind: input, shape index: {}]   ;;  %s3206_s3 = inlined_call_operand.vmem [shape: f32[1,128], index: 3, kind: input, shape index: {}]   ;;  %s3207_s4 = inlined_call_operand.vmem [shape: bf16[32,128], index: 4, kind: input, shape index: {}]   ;;  %s3208_s5 = inlined_call_operand.vmem [shape: bf16[32,128], index: 5, kind: input, shape index: {}]   ;;  %s3209_s6 = inlined_call_operand.vmem [shape: f32[1,128], index: 6, kind: input, shape index: {}]   ;;  %s3210_s7 = inlined_call_operand.vmem [shape: f32[32,128], index: 7, kind: input, shape index: {}]   ;;  %s3211_s9 = inlined_call_operand.vmem [shape: f32[128,128], index: 9, kind: input, shape index: {}]   ;;  %s3212_s8 = inlined_call_operand.vmem [shape: f32[1,128], index: 8, kind: input, shape index: {}]   ;;  %s3213_s10 = inlined_call_operand.vmem [shape: f32[1,128], index: 10, kind: input, shape index: {}]   ;;  %s3214_s11 = inlined_call_operand.vmem [shape: f32[8,128], index: 11, kind: output, shape index: {}]  }
   0x1   :  { %v2485_v0 = vld [vmem:[%s3203_s1] sm:$0xff]   ;;  %2170 = vmatprep.subr.bf16.mxu1 %v2607_v1  ;;  %2174 = vmatprep.mubr.msk.bf16.mxu1 %vm2608_vm0, %v2607_v1  ;;  %v2486_v2 = vld [vmem:[%s3203_s1 + $0x8] sm:$0xff]   ;;  %v2487_v3 = vld [vmem:[%s3203_s1 + $0x10] sm:$0xff]   ;;  %v2610_v26 = vmov 1.0   ;;  %vm229_vm4 = vcmask 261120  }
   0x2   :  { %2146 = vmatprep.subr.bf16.mxu0 %v2485_v0  ;;  %v2689_v4 = vld [vmem:[%s3204_s2] sm:$0xff]   ;;  %v2488_v5 = vld [vmem:[%s3203_s1 + $0x18] sm:$0xff]   ;;  %v2698_v6 = vld [vmem:[%s3204_s2 + $0x8] sm:$0xff]   ;;  %v40_v19 = vand.u32 127, %v39_v18 }
   0x3   :  { %2147 = vmatpush3.bf16.msra.mxu0 %v2485_v0  ;;  %2171 = vmatpush3.bf16.msra.mxu1 %v2689_v4  ;;  %v2495_v7 = vld [vmem:[%s3205_s0] sm:$0xff]   ;;  %v2490_v9 = vld [vmem:[%s3203_s1 + $0x28] sm:$0xff]   ;;  %v2491_v11 = vld [vmem:[%s3203_s1 + $0x30] sm:$0xff]  }
   0x4   :  { %2148 = vmatprep.subr.bf16.mxu0 %v2486_v2  ;;  %2172 = vmatprep.subr.bf16.mxu1 %v2607_v1  ;;  %v2489_v8 = vld [vmem:[%s3203_s1 + $0x20] sm:$0xff]   ;;  %v2493_v12 = vld [vmem:[%s3203_s1 + $0x38] sm:$0xff]   ;;  %v2496_v13 = vld [vmem:[%s3205_s0 + $0x8] sm:$0xff]   ;;  %vm41_vm1 = vcmp.ge.s32.totalorder %v40_v19, 64  ;;  %vm42_vm2 = vcmp.lt.s32.totalorder %v40_v19, 96 }
   0x5   :  { %2162 = vmatprep.mubr.bf16.mxu0 %v2495_v7  ;;  %v2736_v20 = vld [vmem:[%s3206_s3] ss:$0 sm:$0xff]  ;;  %vm2740_vm3 = vmand %vm41_vm1, %vm42_vm2  ;;  %v2771_v49 = vld [vmem:[%s3207_s4 + $0x8] sm:$0xff]  }
   0x6   :  { %v2749_v27 = vsel %vm2740_vm3, 2.0, %v2610_v26  ;;  %v2764_v47 = vld [vmem:[%s3207_s4] sm:$0xff]   ;;  %v2788_v51 = vld [vmem:[%s3208_s5 + $0x8] sm:$0xff]  }
   0x7   :  { %2149 = vmatpush3.bf16.msra.mxu0 %v2486_v2  ;;  %2173 = vmatpush3.bf16.msra.mxu1 %v2698_v6  ;;  %v2780_v50 = vld [vmem:[%s3208_s5] sm:$0xff]   ;;  %v1770_v22 = vld [vmem:[%s3210_s7 + $0x8] sm:$0xff] }
   0x8   :  { %2150 = vmatprep.subr.bf16.mxu0 %v2487_v3  ;;  %2178 = vmatprep.subr.bf16.mxu1 %v2607_v1  ;;  %v2807_v62 = vld [vmem:[%s3209_s6] ss:$0 sm:$0xff] }
   0xa   :  { %2175 = vmatmul.mubr.bf16.vlgmr.msra.gmra.mrb[0].mxu1 %v2609_v10 }
   0xb   :  { %2151 = vmatpush3.bf16.msra.mxu0 %v2487_v3  ;;  %2179 = vmatpush3.bf16.msra.mxu1 %v2689_v4 }
   0xc   :  { %2152 = vmatprep.subr.bf16.mxu0 %v2488_v5  ;;  %2182 = vmatprep.mubr.msk.bf16.mxu1 %vm2608_vm0, %v2607_v1 }
   0xd   :  { %2180 = vmatprep.subr.bf16.mxu1 %v2607_v1 }
   0xf   :  { %2153 = vmatpush3.bf16.msra.mxu0 %v2488_v5  ;;  %2181 = vmatpush3.bf16.msra.mxu1 %v2698_v6 }
  0x10   :  { %2154 = vmatprep.subr.bf16.mxu0 %v2489_v8  ;;  %2186 = vmatprep.subr.bf16.mxu1 %v2607_v1 }
  0x13   :  { %2155 = vmatpush3.bf16.msra.mxu0 %v2489_v8 }
  0x14   :  { %2156 = vmatprep.subr.bf16.mxu0 %v2490_v9 }
  0x17   :  { %2157 = vmatpush3.bf16.msra.mxu0 %v2490_v9 }
  0x18   :  { %2158 = vmatprep.subr.bf16.mxu0 %v2491_v11 }
  0x1b   :  { %2159 = vmatpush3.bf16.msra.mxu0 %v2491_v11 }
  0x1c   :  { %2160 = vmatprep.subr.bf16.mxu0 %v2493_v12 }
  0x1f   :  { %2161 = vmatpush3.bf16.msra.mxu0 %v2493_v12 }
  0x20   :  { %2250 = vmatprep.subr.bf16.mxu0 %v2607_v1 }
  0x22   :  { %2163 = vmatmul.mubr.bf16.vlgmr.msra.gmra.mrb[0].mxu0 %v2496_v13 }
  0x23   :  { %2251 = vmatpush3.bf16.msra.mxu0 %v2689_v4 }
  0x24   :  { %2252 = vmatprep.subr.bf16.mxu0 %v2607_v1 }
  0x27   :  { %2253 = vmatpush3.bf16.msra.mxu0 %v2698_v6 }
  0x28   :  { %2258 = vmatprep.subr.bf16.mxu0 %v2607_v1 }
  0xdd   :  { %v267_v14 = vpop.f32.mrb[0].mxu1 }
  0xde   :  { %v2176_v15 = vpop.f32.mrb[1].mxu1 }
  0xdf   :  { %v270_v16 = vpop.f32.mrb[2].mxu1 }
  0xe0   :  { %v2177_v17 = vpop.f32.mrb[3].mxu1 }
  0xf5   :  { %v2738_v21 = vpop.f32.mrb[0].mxu0 }
  0xf6   :  { %v182_v23 = vpop.f32.mrb[1].mxu0 }
  0xf7   :  { %v183_v24 = vadd.f32 %v2736_v20, %v182_v23  ;;  %v2745_v25 = vpop.f32.mrb[2].mxu0 }
  0xf8   :  { %v185_v28 = vpop.f32.mrb[3].mxu0 }
  0xf9   :  { %v268_v29 = vadd.f32 %v267_v14, %v183_v24  ;;  %v186_v52 = vadd.f32 %v2736_v20, %v185_v28 }
  0xfb   :  { %v273_v30 = vmul.f32 %v268_v29, %v2749_v27 }
  0xfd   :  { %v1977_v31 = vmul.f32 -1.442695, %v273_v30 }
  0xff   :  { %2503 = vpow2.f32 %v1977_v31 }
 0x109   :  { %v2504_v32 = vpop.eup %2503 }
 0x10a   :  { %v277_v33 = vadd.f32 1.0, %v2504_v32 }
 0x10c   :  { %2505 = vrcp.f32 %v277_v33 }
 0x116   :  { %v2506_v34 = vpop.eup %2505 }
 0x117   :  { %v280_v35 = vmul.f32 2.0, %v2506_v34 }
 0x119   :  { %v1978_v36 = vadd.f32 -1.0, %v280_v35 }
 0x11b   :  { %v282_v37 = vsel %vm2740_vm3, %v1978_v36, %v2506_v34 }
 0x11c   :  { %285 = vrot.lane.b32.xlu0 %v282_v37, %s2611_s22  ;;  %v283_v40 = vmul.f32 0.0, %v282_v37 }
 0x18e   :  { %v286_v38 = vpop.permute.xlu0 %285 }
 0x18f   :  { %v288_v39 = vmul.f32 %v286_v38, %v282_v37 }
 0x191   :  { %290 = vrot.lane.b32.xlu0 %v288_v39, %s2612_s23 }
 0x203   :  { %v291_v41 = vpop.permute.xlu0 %290 }
 0x204   :  { %v2756_v42 = vadd.f32 %v291_v41, %v283_v40 }
 0x206   :  { %2507 = vtanh.f32 %v2756_v42 }
 0x210   :  { %v2508_v43 = vpop.eup %2507 }
 0x211   :  { %296 = vrot.lane.b32.xlu1 %v2508_v43, %s2611_s22 }
 0x283   :  { %v297_v44 = vpop.permute.xlu1 %296 }
 0x284   :  { %v299_v45 = vmul.f32 %v297_v44, %v282_v37  ;;  %v191_v44 = vadd.f32 %v2738_v21, %v2736_v20 }
 0x286   :  { %v300_v46 = vpack.c.bf16 %v299_v45, %v299_v45 }
 0x288   :  { %302 = vrot.lane.b32.xlu1 %v300_v46, %s2612_s23 }
 0x2fa   :  { %v303_v48 = vpop.permute.xlu1 %302 }
 0x2fb   :  { %2183 = vmatmul.mubr.msk.bf16.vlgmr.msra.gmra.mrb[4].mxu1 %vm229_vm4, %v303_v48 }
 0x2fc   :  { %2187 = vmatpush3.bf16.msra.mxu1 %v2764_v47  ;;  %2190 = vmatprep.mubr.msk.bf16.mxu1 %vm2608_vm0, %v2607_v1 }
 0x2fd   :  { %2188 = vmatprep.subr.bf16.mxu1 %v2607_v1 }
 0x300   :  { %2189 = vmatpush3.bf16.msra.mxu1 %v2771_v49 }
 0x301   :  { %2194 = vmatprep.subr.bf16.mxu1 %v2607_v1 }
 0x303   :  { %2191 = vmatmul.mubr.msk.bf16.vlgmr.msra.gmra.mrb[8].mxu1 %vm229_vm4, %v303_v48 }
 0x304   :  { %2195 = vmatpush3.bf16.msra.mxu1 %v2780_v50  ;;  %2198 = vmatprep.mubr.msk.bf16.mxu1 %vm2608_vm0, %v2607_v1 }
 0x305   :  { %2196 = vmatprep.subr.bf16.mxu1 %v2607_v1 }
 0x308   :  { %2197 = vmatpush3.bf16.msra.mxu1 %v2788_v51 }
 0x309   :  { %2202 = vmatprep.subr.bf16.mxu1 %v2607_v1 }
 0x30f   :  { %2199 = vmatmul.mubr.bf16.vlgmr.msra.gmra.mrb[8].mxu1 %v2609_v10 }
 0x310   :  { %2203 = vmatpush3.bf16.msra.mxu1 %v2689_v4  ;;  %2206 = vmatprep.mubr.msk.bf16.mxu1 %vm2608_vm0, %v2607_v1 }
 0x311   :  { %2204 = vmatprep.subr.bf16.mxu1 %v2607_v1 }
 0x314   :  { %2205 = vmatpush3.bf16.msra.mxu1 %v2698_v6 }
 0x315   :  { %2210 = vmatprep.subr.bf16.mxu1 %v2607_v1 }
 0x3ce   :  { %v341_v53 = vpop.f32.mrb[4].mxu1 }
 0x3cf   :  { %v342_v54 = vadd.f32 %v341_v53, %v186_v52  ;;  %v2184_v55 = vpop.f32.mrb[5].mxu1 }
 0x3d0   :  { %v344_v56 = vpop.f32.mrb[6].mxu1 }
 0x3d1   :  { %v347_v57 = vmul.f32 %v342_v54, %v2749_v27  ;;  %v2185_v58 = vpop.f32.mrb[7].mxu1 }
 0x3d3   :  { %v1980_v59 = vmul.f32 -1.442695, %v347_v57 }
 0x3d5   :  { %2509 = vpow2.f32 %v1980_v59 }
 0x3df   :  { %v2510_v60 = vpop.eup %2509 }
 0x3e0   :  { %v351_v61 = vadd.f32 1.0, %v2510_v60 }
 0x3e2   :  { %2511 = vrcp.f32 %v351_v61  ;;  %v487_v63 = vpop.f32.mrb[8].mxu1 }
 0x3e3   :  { %v2438_v0 = vadd.f32 %v2807_v62, %v487_v63  ;;  %v2200_v2 = vpop.f32.mrb[9].mxu1 }
 0x3e4   :  { %v490_v3 = vpop.f32.mrb[10].mxu1 }
 0x3e5   :  { %v493_v5 = vmul.f32 %v2438_v0, %v2749_v27  ;;  %v2201_v7 = vpop.f32.mrb[11].mxu1 }
 0x3e7   :  { %v1988_v8 = vmul.f32 -1.442695, %v493_v5 }
 0x3e9   :  { %2513 = vpow2.f32 %v1988_v8 }
 0x3ec   :  { %v2512_v9 = vpop.eup %2511 }
 0x3ed   :  { %v354_v10 = vmul.f32 2.0, %v2512_v9 }
 0x3ef   :  { %v1981_v11 = vadd.f32 -1.0, %v354_v10 }
 0x3f1   :  { %v356_v12 = vsel %vm2740_vm3, %v1981_v11, %v2512_v9 }
 0x3f2   :  { %359 = vrot.lane.b32.xlu0 %v356_v12, %s2611_s22  ;;  %v357_v28 = vmul.f32 %v356_v12, %v2756_v42 }
 0x3f3   :  { %v2514_v13 = vpop.eup %2513 }
 0x3f4   :  { %v497_v14 = vadd.f32 1.0, %v2514_v13 }
 0x3f6   :  { %2515 = vrcp.f32 %v497_v14 }
 0x400   :  { %v2516_v15 = vpop.eup %2515 }
 0x401   :  { %v500_v16 = vmul.f32 2.0, %v2516_v15 }
 0x403   :  { %v1989_v17 = vadd.f32 -1.0, %v500_v16 }
 0x405   :  { %v502_v18 = vsel %vm2740_vm3, %v1989_v17, %v2516_v15 }
 0x406   :  { %505 = vrot.lane.b32.xlu1 %v502_v18, %s2611_s22  ;;  %v503_v32 = vmul.f32 0.0, %v502_v18 }
 0x464   :  { %v360_v19 = vpop.permute.xlu0 %359 }
 0x465   :  { %v362_v23 = vmul.f32 %v360_v19, %v356_v12 }
 0x467   :  { %364 = vrot.lane.b32.xlu0 %v362_v23, %s2612_s23 }
 0x478   :  { %v506_v24 = vpop.permute.xlu1 %505 }
 0x479   :  { %v508_v26 = vmul.f32 %v506_v24, %v502_v18 }
 0x47b   :  { %510 = vrot.lane.b32.xlu1 %v508_v26, %s2612_s23 }
 0x4d9   :  { %v365_v29 = vpop.permute.xlu0 %364 }
 0x4da   :  { %v2820_v30 = vadd.f32 %v365_v29, %v357_v28 }
 0x4dc   :  { %2517 = vtanh.f32 %v2820_v30 }
 0x4e6   :  { %v2518_v31 = vpop.eup %2517 }
 0x4e7   :  { %370 = vrot.lane.b32.xlu0 %v2518_v31, %s2611_s22 }
 0x4ed   :  { %v511_v33 = vpop.permute.xlu1 %510 }
 0x4ee   :  { %v2824_v34 = vadd.f32 %v511_v33, %v503_v32 }
 0x4f0   :  { %2519 = vtanh.f32 %v2824_v34 }
 0x4fa   :  { %v2520_v35 = vpop.eup %2519 }
 0x4fb   :  { %516 = vrot.lane.b32.xlu1 %v2520_v35, %s2611_s22 }
 0x559   :  { %v371_v36 = vpop.permute.xlu0 %370 }
 0x55a   :  { %v373_v37 = vmul.f32 %v371_v36, %v356_v12 }
 0x55c   :  { %v520_v38 = vpack.c.bf16 %v373_v37, %v373_v37 }
 0x55e   :  { %522 = vrot.lane.b32.xlu0 %v520_v38, %s2612_s23 }
 0x56d   :  { %v517_v39 = vpop.permute.xlu1 %516 }
 0x56e   :  { %v519_v40 = vmul.f32 %v517_v39, %v502_v18  ;;  %v194_v39 = vadd.f32 %v2745_v25, %v2736_v20 }
 0x570   :  { %v594_v41 = vpack.c.bf16 %v519_v40, %v519_v40 }
 0x572   :  { %636 = vrot.lane.b32.xlu1 %v594_v41, %s2612_s23 }
 0x5d0   :  { %v523_v42 = vpop.permute.xlu0 %522 }
 0x5d1   :  { %2207 = vmatmul.mubr.msk.bf16.vlgmr.msra.gmra.mrb[12].mxu1 %vm229_vm4, %v523_v42 }
 0x5d2   :  { %2211 = vmatpush3.bf16.msra.mxu1 %v2764_v47  ;;  %2214 = vmatprep.mubr.msk.bf16.mxu1 %vm2608_vm0, %v2607_v1 }
 0x5d3   :  { %2212 = vmatprep.subr.bf16.mxu1 %v2607_v1 }
 0x5d6   :  { %2213 = vmatpush3.bf16.msra.mxu1 %v2771_v49 }
 0x5d7   :  { %2218 = vmatprep.subr.bf16.mxu1 %v2607_v1 }
 0x5d9   :  { %2215 = vmatmul.mubr.msk.bf16.vlgmr.msra.gmra.mrb[16].mxu1 %vm229_vm4, %v523_v42 }
 0x5da   :  { %2219 = vmatpush3.bf16.msra.mxu1 %v2780_v50  ;;  %2222 = vmatprep.mubr.msk.bf16.mxu1 %vm2608_vm0, %v2607_v1 }
 0x5db   :  { %2220 = vmatprep.subr.bf16.mxu1 %v2607_v1 }
 0x5de   :  { %2221 = vmatpush3.bf16.msra.mxu1 %v2788_v51 }
 0x5df   :  { %2226 = vmatprep.subr.bf16.mxu1 %v2607_v1 }
 0x5e4   :  { %v637_v43 = vpop.permute.xlu1 %636 }
 0x5e5   :  { %2223 = vmatmul.mubr.msk.bf16.vlgmr.msra.gmra.mrb[16].mxu1 %vm229_vm4, %v637_v43 }
 0x5e6   :  { %2227 = vmatpush3.bf16.msra.mxu1 %v2689_v4  ;;  %2230 = vmatprep.mubr.msk.bf16.mxu1 %vm2608_vm0, %v2607_v1 }
 0x5e7   :  { %2228 = vmatprep.subr.bf16.mxu1 %v2607_v1 }
 0x5ea   :  { %2229 = vmatpush3.bf16.msra.mxu1 %v2698_v6 }
 0x5eb   :  { %2234 = vmatprep.subr.bf16.mxu1 %v2607_v1 }
 0x6a4   :  { %v561_v45 = vpop.f32.mrb[12].mxu1 }
 0x6a5   :  { %v562_v46 = vadd.f32 %v561_v45, %v191_v44  ;;  %v2208_v48 = vpop.f32.mrb[13].mxu1 }
 0x6a6   :  { %v564_v52 = vpop.f32.mrb[14].mxu1 }
 0x6a7   :  { %v567_v53 = vmul.f32 %v562_v46, %v2749_v27  ;;  %v2209_v54 = vpop.f32.mrb[15].mxu1 }
 0x6a9   :  { %v1991_v55 = vmul.f32 -1.442695, %v567_v53 }
 0x6ab   :  { %2521 = vpow2.f32 %v1991_v55 }
 0x6b5   :  { %v2522_v56 = vpop.eup %2521 }
 0x6b6   :  { %v571_v57 = vadd.f32 1.0, %v2522_v56 }
 0x6b8   :  { %2523 = vrcp.f32 %v571_v57  ;;  %v675_v58 = vpop.f32.mrb[16].mxu1 }
 0x6b9   :  { %v2439_v59 = vadd.f32 %v2807_v62, %v675_v58  ;;  %v2224_v60 = vpop.f32.mrb[17].mxu1 }
 0x6ba   :  { %v678_v61 = vpop.f32.mrb[18].mxu1 }
 0x6bb   :  { %v681_v63 = vmul.f32 %v2439_v59, %v2749_v27  ;;  %v2225_v21 = vpop.f32.mrb[19].mxu1 }
 0x6bd   :  { %v1995_v0 = vmul.f32 -1.442695, %v681_v63 }
 0x6bf   :  { %2525 = vpow2.f32 %v1995_v0 }
 0x6c2   :  { %v2524_v2 = vpop.eup %2523 }
 0x6c3   :  { %v574_v3 = vmul.f32 2.0, %v2524_v2 }
 0x6c5   :  { %v1992_v5 = vadd.f32 -1.0, %v574_v3 }
 0x6c7   :  { %v576_v7 = vsel %vm2740_vm3, %v1992_v5, %v2524_v2 }
 0x6c8   :  { %579 = vrot.lane.b32.xlu0 %v576_v7, %s2611_s22  ;;  %v577_v18 = vmul.f32 %v576_v7, %v2820_v30 }
 0x6c9   :  { %v2526_v8 = vpop.eup %2525 }
 0x6ca   :  { %v685_v9 = vadd.f32 1.0, %v2526_v8 }
 0x6cc   :  { %2527 = vrcp.f32 %v685_v9 }
 0x6d6   :  { %v2528_v10 = vpop.eup %2527 }
 0x6d7   :  { %v688_v11 = vmul.f32 2.0, %v2528_v10 }
 0x6d9   :  { %v1996_v12 = vadd.f32 -1.0, %v688_v11 }
 0x6db   :  { %v690_v13 = vsel %vm2740_vm3, %v1996_v12, %v2528_v10 }
 0x6dc   :  { %693 = vrot.lane.b32.xlu1 %v690_v13, %s2611_s22  ;;  %v691_v26 = vmul.f32 %v690_v13, %v2824_v34 }
 0x73a   :  { %v580_v14 = vpop.permute.xlu0 %579 }
 0x73b   :  { %v582_v15 = vmul.f32 %v580_v14, %v576_v7 }
 0x73d   :  { %584 = vrot.lane.b32.xlu0 %v582_v15, %s2612_s23 }
 0x74e   :  { %v694_v16 = vpop.permute.xlu1 %693 }
 0x74f   :  { %v696_v17 = vmul.f32 %v694_v16, %v690_v13 }
 0x751   :  { %698 = vrot.lane.b32.xlu1 %v696_v17, %s2612_s23 }
 0x7af   :  { %v585_v19 = vpop.permute.xlu0 %584 }
 0x7b0   :  { %v2865_v23 = vadd.f32 %v585_v19, %v577_v18  ;;  %v2501_v19 = vld [vmem:[%s3205_s0 + $0x10] sm:$0xff]  }
 0x7b1   :  { %2166 = vmatprep.mubr.bf16.mxu0 %v2501_v19 }
 0x7b2   :  { %2529 = vtanh.f32 %v2865_v23 }
 0x7bc   :  { %v2530_v24 = vpop.eup %2529 }
 0x7bd   :  { %590 = vrot.lane.b32.xlu0 %v2530_v24, %s2611_s22 }
 0x7c3   :  { %v699_v28 = vpop.permute.xlu1 %698 }
 0x7c4   :  { %v2870_v29 = vadd.f32 %v699_v28, %v691_v26 }
 0x7c6   :  { %2531 = vtanh.f32 %v2870_v29 }
 0x7d0   :  { %v2532_v31 = vpop.eup %2531 }
 0x7d1   :  { %704 = vrot.lane.b32.xlu1 %v2532_v31, %s2611_s22 }
 0x82f   :  { %v591_v32 = vpop.permute.xlu0 %590 }
 0x830   :  { %v593_v30 = vmul.f32 %v591_v32, %v576_v7 }
 0x832   :  { %v708_v33 = vpack.c.bf16 %v593_v30, %v593_v30 }
 0x834   :  { %710 = vrot.lane.b32.xlu0 %v708_v33, %s2612_s23 }
 0x843   :  { %v705_v35 = vpop.permute.xlu1 %704 }
 0x844   :  { %v707_v36 = vmul.f32 %v705_v35, %v690_v13 }
 0x846   :  { %v782_v37 = vpack.c.bf16 %v707_v36, %v707_v36 }
 0x848   :  { %824 = vrot.lane.b32.xlu1 %v782_v37, %s2612_s23 }
 0x8a6   :  { %v711_v38 = vpop.permute.xlu0 %710 }
 0x8a7   :  { %2231 = vmatmul.mubr.msk.bf16.vlgmr.msra.gmra.mrb[20].mxu1 %vm229_vm4, %v711_v38 }
 0x8a8   :  { %2235 = vmatpush3.bf16.msra.mxu1 %v2764_v47  ;;  %2238 = vmatprep.mubr.msk.bf16.mxu1 %vm2608_vm0, %v2607_v1 }
 0x8a9   :  { %2236 = vmatprep.subr.bf16.mxu1 %v2607_v1 }
 0x8ac   :  { %2237 = vmatpush3.bf16.msra.mxu1 %v2771_v49 }
 0x8ad   :  { %2242 = vmatprep.subr.bf16.mxu1 %v2607_v1 }
 0x8af   :  { %2239 = vmatmul.mubr.msk.bf16.vlgmr.msra.gmra.mrb[24].mxu1 %vm229_vm4, %v711_v38 }
 0x8b0   :  { %2243 = vmatpush3.bf16.msra.mxu1 %v2780_v50  ;;  %2246 = vmatprep.mubr.msk.bf16.mxu1 %vm2608_vm0, %v2607_v1 }
 0x8b1   :  { %2244 = vmatprep.subr.bf16.mxu1 %v2607_v1 }
 0x8b4   :  { %2245 = vmatpush3.bf16.msra.mxu1 %v2788_v51 }
 0x8b5   :  { %2274 = vmatprep.subr.bf16.mxu1 %v2607_v1 }
 0x8ba   :  { %v825_v34 = vpop.permute.xlu1 %824 }
 0x8bb   :  { %2247 = vmatmul.mubr.msk.bf16.vlgmr.msra.gmra.mrb[24].mxu1 %vm229_vm4, %v825_v34 }
 0x8bc   :  { %2275 = vmatpush3.bf16.msra.mxu1 %v2689_v4  ;;  %2278 = vmatprep.mubr.msk.bf16.mxu1 %vm2608_vm0, %v2607_v1 }
 0x8bd   :  { %2276 = vmatprep.subr.bf16.mxu1 %v2607_v1 }
 0x8c0   :  { %2277 = vmatpush3.bf16.msra.mxu1 %v2698_v6 }
 0x8c1   :  { %2282 = vmatprep.subr.bf16.mxu1 %v2607_v1 }
 0x97a   :  { %v749_v40 = vpop.f32.mrb[20].mxu1 }
 0x97b   :  { %v750_v41 = vadd.f32 %v749_v40, %v194_v39  ;;  %v2232_v42 = vpop.f32.mrb[21].mxu1 }
 0x97c   :  { %v752_v43 = vpop.f32.mrb[22].mxu1 }
 0x97d   :  { %v755_v44 = vmul.f32 %v750_v41, %v2749_v27  ;;  %v2233_v45 = vpop.f32.mrb[23].mxu1 }
 0x97f   :  { %v1998_v46 = vmul.f32 -1.442695, %v755_v44 }
 0x981   :  { %2533 = vpow2.f32 %v1998_v46 }
 0x98b   :  { %v2534_v48 = vpop.eup %2533 }
 0x98c   :  { %v759_v52 = vadd.f32 1.0, %v2534_v48 }
 0x98e   :  { %2535 = vrcp.f32 %v759_v52  ;;  %v863_v53 = vpop.f32.mrb[24].mxu1 }
 0x98f   :  { %v2440_v54 = vadd.f32 %v2807_v62, %v863_v53  ;;  %v2248_v55 = vpop.f32.mrb[25].mxu1 }
 0x990   :  { %v866_v56 = vpop.f32.mrb[26].mxu1 }
 0x991   :  { %v869_v57 = vmul.f32 %v2440_v54, %v2749_v27  ;;  %v2249_v25 = vpop.f32.mrb[27].mxu1 }
 0x993   :  { %v2002_v58 = vmul.f32 -1.442695, %v869_v57 }
 0x995   :  { %2537 = vpow2.f32 %v2002_v58 }
 0x998   :  { %v2536_v59 = vpop.eup %2535 }
 0x999   :  { %v762_v60 = vmul.f32 2.0, %v2536_v59 }
 0x99b   :  { %v1999_v61 = vadd.f32 -1.0, %v762_v60 }
 0x99d   :  { %v764_v63 = vsel %vm2740_vm3, %v1999_v61, %v2536_v59 }
 0x99e   :  { %767 = vrot.lane.b32.xlu0 %v764_v63, %s2611_s22  ;;  %v765_v12 = vmul.f32 %v764_v63, %v2865_v23  ;;  %v2502_v23 = vld [vmem:[%s3205_s0 + $0x18] sm:$0xff]  }
 0x99f   :  { %v2538_v21 = vpop.eup %2537  ;;  %2167 = vmatmul.mubr.bf16.gmra.mrb[4].mxu0 %v2502_v23 }
 0x9a0   :  { %v873_v0 = vadd.f32 1.0, %v2538_v21  ;;  %2254 = vmatprep.mubr.msk.bf16.mxu0 %vm2608_vm0, %v2607_v1 }
 0x9a2   :  { %2539 = vrcp.f32 %v873_v0 }
 0x9ac   :  { %v2540_v2 = vpop.eup %2539 }
 0x9ad   :  { %v876_v3 = vmul.f32 2.0, %v2540_v2 }
 0x9af   :  { %v2003_v5 = vadd.f32 -1.0, %v876_v3 }
 0x9b1   :  { %v878_v7 = vsel %vm2740_vm3, %v2003_v5, %v2540_v2 }
 0x9b2   :  { %881 = vrot.lane.b32.xlu1 %v878_v7, %s2611_s22  ;;  %v879_v16 = vmul.f32 %v878_v7, %v2870_v29 }
 0xa10   :  { %v768_v8 = vpop.permute.xlu0 %767 }
 0xa11   :  { %v770_v9 = vmul.f32 %v768_v8, %v764_v63 }
 0xa13   :  { %772 = vrot.lane.b32.xlu0 %v770_v9, %s2612_s23 }
 0xa24   :  { %v882_v10 = vpop.permute.xlu1 %881 }
 0xa25   :  { %v884_v11 = vmul.f32 %v882_v10, %v878_v7 }
 0xa27   :  { %886 = vrot.lane.b32.xlu1 %v884_v11, %s2612_s23 }
 0xa72   :  { %v2930_v33 = vpop.f32.mrb[4].mxu0 }
 0xa73   :  { %v198_v35 = vpop.f32.mrb[5].mxu0 }
 0xa74   :  { %v2932_v36 = vpop.f32.mrb[6].mxu0  ;;  %v199_v39 = vadd.f32 %v2736_v20, %v198_v35 }
 0xa75   :  { %v2934_v37 = vpop.f32.mrb[7].mxu0 }
 0xa76   :  { %v202_v35 = vadd.f32 %v2736_v20, %v2934_v37 }
 0xa85   :  { %v773_v13 = vpop.permute.xlu0 %772 }
 0xa86   :  { %v2911_v14 = vadd.f32 %v773_v13, %v765_v12 }
 0xa88   :  { %2541 = vtanh.f32 %v2911_v14 }
 0xa92   :  { %v2542_v15 = vpop.eup %2541 }
 0xa93   :  { %778 = vrot.lane.b32.xlu0 %v2542_v15, %s2611_s22 }
 0xa99   :  { %v887_v17 = vpop.permute.xlu1 %886 }
 0xa9a   :  { %v2916_v18 = vadd.f32 %v887_v17, %v879_v16 }
 0xa9c   :  { %2543 = vtanh.f32 %v2916_v18 }
 0xaa6   :  { %v2544_v24 = vpop.eup %2543 }
 0xaa7   :  { %892 = vrot.lane.b32.xlu1 %v2544_v24, %s2611_s22 }
 0xb05   :  { %v779_v26 = vpop.permute.xlu0 %778 }
 0xb06   :  { %v781_v28 = vmul.f32 %v779_v26, %v764_v63 }
 0xb08   :  { %v896_v29 = vpack.c.bf16 %v781_v28, %v781_v28 }
 0xb0a   :  { %898 = vrot.lane.b32.xlu0 %v896_v29, %s2612_s23 }
 0xb19   :  { %v893_v31 = vpop.permute.xlu1 %892 }
 0xb1a   :  { %v895_v32 = vmul.f32 %v893_v31, %v878_v7 }
 0xb1c   :  { %v970_v30 = vpack.c.bf16 %v895_v32, %v895_v32 }
 0xb1e   :  { %1012 = vrot.lane.b32.xlu1 %v970_v30, %s2612_s23 }
 0xb7c   :  { %v899_v38 = vpop.permute.xlu0 %898 }
 0xb7d   :  { %2255 = vmatmul.mubr.msk.bf16.vlgmr.msra.gmra.mrb[8].mxu0 %vm229_vm4, %v899_v38 }
 0xb7e   :  { %2259 = vmatpush3.bf16.msra.mxu0 %v2764_v47  ;;  %2262 = vmatprep.mubr.msk.bf16.mxu0 %vm2608_vm0, %v2607_v1 }
 0xb7f   :  { %2260 = vmatprep.subr.bf16.mxu0 %v2607_v1 }
 0xb82   :  { %2261 = vmatpush3.bf16.msra.mxu0 %v2771_v49 }
 0xb83   :  { %2266 = vmatprep.subr.bf16.mxu0 %v2607_v1 }
 0xb85   :  { %2263 = vmatmul.mubr.msk.bf16.vlgmr.msra.gmra.mrb[12].mxu0 %vm229_vm4, %v899_v38 }
 0xb86   :  { %2267 = vmatpush3.bf16.msra.mxu0 %v2780_v50  ;;  %2270 = vmatprep.mubr.msk.bf16.mxu0 %vm2608_vm0, %v2607_v1 }
 0xb87   :  { %2268 = vmatprep.subr.bf16.mxu0 %v2607_v1 }
 0xb8a   :  { %2269 = vmatpush3.bf16.msra.mxu0 %v2788_v51 }
 0xb8b   :  { %2298 = vmatprep.subr.bf16.mxu0 %v2607_v1 }
 0xb90   :  { %v1013_v34 = vpop.permute.xlu1 %1012 }
 0xb91   :  { %2271 = vmatmul.mubr.msk.bf16.vlgmr.msra.gmra.mrb[12].mxu0 %vm229_vm4, %v1013_v34 }
 0xb92   :  { %2299 = vmatpush3.bf16.msra.mxu0 %v2689_v4  ;;  %2302 = vmatprep.mubr.msk.bf16.mxu0 %vm2608_vm0, %v2607_v1 }
 0xb93   :  { %2300 = vmatprep.subr.bf16.mxu0 %v2607_v1 }
 0xb96   :  { %2301 = vmatpush3.bf16.msra.mxu0 %v2698_v6 }
 0xb97   :  { %2306 = vmatprep.subr.bf16.mxu0 %v2607_v1 }
 0xc50   :  { %v937_v40 = vpop.f32.mrb[8].mxu0 }
 0xc51   :  { %v938_v41 = vadd.f32 %v937_v40, %v199_v39  ;;  %v2256_v42 = vpop.f32.mrb[9].mxu0 }
 0xc52   :  { %v940_v43 = vpop.f32.mrb[10].mxu0 }
 0xc53   :  { %v943_v44 = vmul.f32 %v938_v41, %v2749_v27  ;;  %v2257_v45 = vpop.f32.mrb[11].mxu0 }
 0xc55   :  { %v2005_v46 = vmul.f32 -1.442695, %v943_v44 }
 0xc57   :  { %2545 = vpow2.f32 %v2005_v46 }
 0xc61   :  { %v2546_v48 = vpop.eup %2545 }
 0xc62   :  { %v947_v52 = vadd.f32 1.0, %v2546_v48 }
 0xc64   :  { %2547 = vrcp.f32 %v947_v52  ;;  %v1051_v53 = vpop.f32.mrb[12].mxu0 }
 0xc65   :  { %v2441_v54 = vadd.f32 %v2807_v62, %v1051_v53  ;;  %v2272_v55 = vpop.f32.mrb[13].mxu0 }
 0xc66   :  { %v1054_v56 = vpop.f32.mrb[14].mxu0 }
 0xc67   :  { %v1057_v57 = vmul.f32 %v2441_v54, %v2749_v27  ;;  %v2273_v25 = vpop.f32.mrb[15].mxu0 }
 0xc69   :  { %v2009_v58 = vmul.f32 -1.442695, %v1057_v57 }
 0xc6b   :  { %2549 = vpow2.f32 %v2009_v58 }
 0xc6e   :  { %v2548_v59 = vpop.eup %2547 }
 0xc6f   :  { %v950_v60 = vmul.f32 2.0, %v2548_v59 }
 0xc71   :  { %v2006_v61 = vadd.f32 -1.0, %v950_v60 }
 0xc73   :  { %v952_v63 = vsel %vm2740_vm3, %v2006_v61, %v2548_v59 }
 0xc74   :  { %955 = vrot.lane.b32.xlu0 %v952_v63, %s2611_s22  ;;  %v953_v12 = vmul.f32 %v952_v63, %v2911_v14 }
 0xc75   :  { %v2550_v21 = vpop.eup %2549 }
 0xc76   :  { %v1061_v0 = vadd.f32 1.0, %v2550_v21 }
 0xc78   :  { %2551 = vrcp.f32 %v1061_v0 }
 0xc82   :  { %v2552_v2 = vpop.eup %2551 }
 0xc83   :  { %v1064_v3 = vmul.f32 2.0, %v2552_v2 }
 0xc85   :  { %v2010_v5 = vadd.f32 -1.0, %v1064_v3 }
 0xc87   :  { %v1066_v7 = vsel %vm2740_vm3, %v2010_v5, %v2552_v2 }
 0xc88   :  { %1069 = vrot.lane.b32.xlu1 %v1066_v7, %s2611_s22  ;;  %v1067_v17 = vmul.f32 %v1066_v7, %v2916_v18 }
 0xce6   :  { %v956_v8 = vpop.permute.xlu0 %955 }
 0xce7   :  { %v958_v9 = vmul.f32 %v956_v8, %v952_v63 }
 0xce9   :  { %960 = vrot.lane.b32.xlu0 %v958_v9, %s2612_s23 }
 0xcfa   :  { %v1070_v10 = vpop.permute.xlu1 %1069 }
 0xcfb   :  { %v1072_v11 = vmul.f32 %v1070_v10, %v1066_v7 }
 0xcfd   :  { %1074 = vrot.lane.b32.xlu1 %v1072_v11, %s2612_s23 }
 0xd5b   :  { %v961_v13 = vpop.permute.xlu0 %960 }
 0xd5c   :  { %v2970_v15 = vadd.f32 %v961_v13, %v953_v12 }
 0xd5e   :  { %2553 = vtanh.f32 %v2970_v15 }
 0xd68   :  { %v2554_v16 = vpop.eup %2553 }
 0xd69   :  { %966 = vrot.lane.b32.xlu0 %v2554_v16, %s2611_s22 }
 0xd6f   :  { %v1075_v19 = vpop.permute.xlu1 %1074 }
 0xd70   :  { %v2975_v23 = vadd.f32 %v1075_v19, %v1067_v17 }
 0xd72   :  { %2555 = vtanh.f32 %v2975_v23 }
 0xd7c   :  { %v2556_v24 = vpop.eup %2555 }
 0xd7d   :  { %1080 = vrot.lane.b32.xlu1 %v2556_v24, %s2611_s22 }
 0xddb   :  { %v967_v26 = vpop.permute.xlu0 %966 }
 0xddc   :  { %v969_v14 = vmul.f32 %v967_v26, %v952_v63 }
 0xdde   :  { %v1084_v28 = vpack.c.bf16 %v969_v14, %v969_v14 }
 0xde0   :  { %1086 = vrot.lane.b32.xlu0 %v1084_v28, %s2612_s23  ;;  %v207_v28 = vadd.f32 %v2930_v33, %v2736_v20 }
 0xdef   :  { %v1081_v29 = vpop.permute.xlu1 %1080 }
 0xdf0   :  { %v1083_v31 = vmul.f32 %v1081_v29, %v1066_v7 }
 0xdf2   :  { %v1158_v32 = vpack.c.bf16 %v1083_v31, %v1083_v31 }
 0xdf4   :  { %1200 = vrot.lane.b32.xlu1 %v1158_v32, %s2612_s23 }
 0xe52   :  { %v1087_v30 = vpop.permute.xlu0 %1086 }
 0xe53   :  { %2279 = vmatmul.mubr.msk.bf16.vlgmr.msra.gmra.mrb[28].mxu1 %vm229_vm4, %v1087_v30 }
 0xe54   :  { %2283 = vmatpush3.bf16.msra.mxu1 %v2764_v47  ;;  %2286 = vmatprep.mubr.msk.bf16.mxu1 %vm2608_vm0, %v2607_v1 }
 0xe55   :  { %2284 = vmatprep.subr.bf16.mxu1 %v2607_v1 }
 0xe58   :  { %2285 = vmatpush3.bf16.msra.mxu1 %v2771_v49 }
 0xe59   :  { %2290 = vmatprep.subr.bf16.mxu1 %v2607_v1 }
 0xe5b   :  { %2287 = vmatmul.mubr.msk.bf16.vlgmr.msra.gmra.mrb[32].mxu1 %vm229_vm4, %v1087_v30 }
 0xe5c   :  { %2291 = vmatpush3.bf16.msra.mxu1 %v2780_v50  ;;  %2294 = vmatprep.mubr.msk.bf16.mxu1 %vm2608_vm0, %v2607_v1 }
 0xe5d   :  { %2292 = vmatprep.subr.bf16.mxu1 %v2607_v1 }
 0xe60   :  { %2293 = vmatpush3.bf16.msra.mxu1 %v2788_v51 }
 0xe61   :  { %2322 = vmatprep.subr.bf16.mxu1 %v2607_v1 }
 0xe66   :  { %v1201_v18 = vpop.permute.xlu1 %1200 }
 0xe67   :  { %2295 = vmatmul.mubr.msk.bf16.vlgmr.msra.gmra.mrb[32].mxu1 %vm229_vm4, %v1201_v18 }
 0xe68   :  { %2323 = vmatpush3.bf16.msra.mxu1 %v2689_v4  ;;  %2326 = vmatprep.mubr.msk.bf16.mxu1 %vm2608_vm0, %v2607_v1 }
 0xe69   :  { %2324 = vmatprep.subr.bf16.mxu1 %v2607_v1 }
 0xe6c   :  { %2325 = vmatpush3.bf16.msra.mxu1 %v2698_v6 }
 0xe6d   :  { %2330 = vmatprep.subr.bf16.mxu1 %v2607_v1 }
 0xf26   :  { %v1125_v38 = vpop.f32.mrb[28].mxu1 }
 0xf27   :  { %v1126_v34 = vadd.f32 %v1125_v38, %v202_v35  ;;  %v2280_v39 = vpop.f32.mrb[29].mxu1 }
 0xf28   :  { %v1128_v40 = vpop.f32.mrb[30].mxu1 }
 0xf29   :  { %v1131_v41 = vmul.f32 %v1126_v34, %v2749_v27  ;;  %v2281_v42 = vpop.f32.mrb[31].mxu1 }
 0xf2b   :  { %v2012_v4 = vmul.f32 -1.442695, %v1131_v41 }
 0xf2d   :  { %2557 = vpow2.f32 %v2012_v4 }
 0xf37   :  { %v2558_v43 = vpop.eup %2557 }
 0xf38   :  { %v1135_v44 = vadd.f32 1.0, %v2558_v43 }
 0xf3a   :  { %2559 = vrcp.f32 %v1135_v44  ;;  %v1239_v45 = vpop.f32.mrb[32].mxu1 }
 0xf3b   :  { %v2442_v6 = vadd.f32 %v2807_v62, %v1239_v45  ;;  %v2296_v46 = vpop.f32.mrb[33].mxu1 }
 0xf3c   :  { %v1242_v48 = vpop.f32.mrb[34].mxu1 }
 0xf3d   :  { %v1245_v52 = vmul.f32 %v2442_v6, %v2749_v27  ;;  %v2297_v37 = vpop.f32.mrb[35].mxu1 }
 0xf3f   :  { %v2016_v53 = vmul.f32 -1.442695, %v1245_v52 }
 0xf41   :  { %2561 = vpow2.f32 %v2016_v53 }
 0xf44   :  { %v2560_v54 = vpop.eup %2559 }
 0xf45   :  { %v1138_v55 = vmul.f32 2.0, %v2560_v54 }
 0xf47   :  { %v2013_v56 = vadd.f32 -1.0, %v1138_v55 }
 0xf49   :  { %v1140_v57 = vsel %vm2740_vm3, %v2013_v56, %v2560_v54 }
 0xf4a   :  { %1143 = vrot.lane.b32.xlu0 %v1140_v57, %s2611_s22  ;;  %v1141_v5 = vmul.f32 %v1140_v57, %v2970_v15 }
 0xf4b   :  { %v2562_v25 = vpop.eup %2561 }
 0xf4c   :  { %v1249_v58 = vadd.f32 1.0, %v2562_v25 }
 0xf4e   :  { %2563 = vrcp.f32 %v1249_v58 }
 0xf58   :  { %v2564_v59 = vpop.eup %2563 }
 0xf59   :  { %v1252_v60 = vmul.f32 2.0, %v2564_v59 }
 0xf5b   :  { %v2017_v61 = vadd.f32 -1.0, %v1252_v60 }
 0xf5d   :  { %v1254_v63 = vsel %vm2740_vm3, %v2017_v61, %v2564_v59 }
 0xf5e   :  { %1257 = vrot.lane.b32.xlu1 %v1254_v63, %s2611_s22  ;;  %v1255_v10 = vmul.f32 %v1254_v63, %v2975_v23 }
 0xfbc   :  { %v1144_v21 = vpop.permute.xlu0 %1143 }
 0xfbd   :  { %v1146_v0 = vmul.f32 %v1144_v21, %v1140_v57 }
 0xfbf   :  { %1148 = vrot.lane.b32.xlu0 %v1146_v0, %s2612_s23 }
 0xfd0   :  { %v1258_v2 = vpop.permute.xlu1 %1257 }
 0xfd1   :  { %v1260_v3 = vmul.f32 %v1258_v2, %v1254_v63 }
 0xfd3   :  { %1262 = vrot.lane.b32.xlu1 %v1260_v3, %s2612_s23 }
0x1031   :  { %v1149_v7 = vpop.permute.xlu0 %1148 }
0x1032   :  { %v3016_v8 = vadd.f32 %v1149_v7, %v1141_v5 }
0x1034   :  { %2565 = vtanh.f32 %v3016_v8 }
0x103e   :  { %v2566_v9 = vpop.eup %2565 }
0x103f   :  { %1154 = vrot.lane.b32.xlu0 %v2566_v9, %s2611_s22 }
0x1045   :  { %v1263_v11 = vpop.permute.xlu1 %1262 }
0x1046   :  { %v3021_v12 = vadd.f32 %v1263_v11, %v1255_v10 }
0x1048   :  { %2567 = vtanh.f32 %v3021_v12 }
0x1052   :  { %v2568_v13 = vpop.eup %2567 }
0x1053   :  { %1268 = vrot.lane.b32.xlu1 %v2568_v13, %s2611_s22 }
0x10b1   :  { %v1155_v16 = vpop.permute.xlu0 %1154 }
0x10b2   :  { %v1157_v15 = vmul.f32 %v1155_v16, %v1140_v57 }
0x10b4   :  { %v1272_v17 = vpack.c.bf16 %v1157_v15, %v1157_v15 }
0x10b6   :  { %1274 = vrot.lane.b32.xlu0 %v1272_v17, %s2612_s23 }
0x10c5   :  { %v1269_v19 = vpop.permute.xlu1 %1268 }
0x10c6   :  { %v1271_v24 = vmul.f32 %v1269_v19, %v1254_v63 }
0x10c8   :  { %v1346_v26 = vpack.c.bf16 %v1271_v24, %v1271_v24 }
0x10ca   :  { %1388 = vrot.lane.b32.xlu1 %v1346_v26, %s2612_s23 }
0x1128   :  { %v1275_v14 = vpop.permute.xlu0 %1274 }
0x1129   :  { %2303 = vmatmul.mubr.msk.bf16.vlgmr.msra.gmra.mrb[16].mxu0 %vm229_vm4, %v1275_v14 }
0x112a   :  { %2307 = vmatpush3.bf16.msra.mxu0 %v2764_v47  ;;  %2310 = vmatprep.mubr.msk.bf16.mxu0 %vm2608_vm0, %v2607_v1 }
0x112b   :  { %2308 = vmatprep.subr.bf16.mxu0 %v2607_v1 }
0x112e   :  { %2309 = vmatpush3.bf16.msra.mxu0 %v2771_v49 }
0x112f   :  { %2314 = vmatprep.subr.bf16.mxu0 %v2607_v1 }
0x1131   :  { %2311 = vmatmul.mubr.msk.bf16.vlgmr.msra.gmra.mrb[20].mxu0 %vm229_vm4, %v1275_v14 }
0x1132   :  { %2315 = vmatpush3.bf16.msra.mxu0 %v2780_v50  ;;  %2318 = vmatprep.mubr.msk.bf16.mxu0 %vm2608_vm0, %v2607_v1 }
0x1133   :  { %2316 = vmatprep.subr.bf16.mxu0 %v2607_v1 }
0x1136   :  { %2317 = vmatpush3.bf16.msra.mxu0 %v2788_v51 }
0x1137   :  { %2346 = vmatprep.subr.bf16.mxu0 %v2607_v1 }
0x113c   :  { %v1389_v23 = vpop.permute.xlu1 %1388 }
0x113d   :  { %2319 = vmatmul.mubr.msk.bf16.vlgmr.msra.gmra.mrb[20].mxu0 %vm229_vm4, %v1389_v23 }
0x113e   :  { %2347 = vmatpush3.bf16.msra.mxu0 %v2764_v47  ;;  %2350 = vmatprep.mubr.msk.bf16.mxu0 %vm2608_vm0, %v2607_v1 }
0x113f   :  { %2348 = vmatprep.subr.bf16.mxu0 %v2607_v1 }
0x1142   :  { %2349 = vmatpush3.bf16.msra.mxu0 %v2771_v49 }
0x1143   :  { %2354 = vmatprep.subr.bf16.mxu0 %v2607_v1 }
0x11fc   :  { %v1313_v29 = vpop.f32.mrb[16].mxu0 }
0x11fd   :  { %v1314_v31 = vadd.f32 %v1313_v29, %v207_v28  ;;  %v2304_v32 = vpop.f32.mrb[17].mxu0 }
0x11fe   :  { %v1316_v30 = vpop.f32.mrb[18].mxu0 }
0x11ff   :  { %v1319_v18 = vmul.f32 %v1314_v31, %v2749_v27  ;;  %v2305_v35 = vpop.f32.mrb[19].mxu0 }
0x1201   :  { %v2019_v38 = vmul.f32 -1.442695, %v1319_v18 }
0x1203   :  { %2569 = vpow2.f32 %v2019_v38 }
0x120d   :  { %v2570_v34 = vpop.eup %2569 }
0x120e   :  { %v1323_v39 = vadd.f32 1.0, %v2570_v34 }
0x1210   :  { %2571 = vrcp.f32 %v1323_v39  ;;  %v1427_v40 = vpop.f32.mrb[20].mxu0 }
0x1211   :  { %v2443_v41 = vadd.f32 %v2807_v62, %v1427_v40  ;;  %v2320_v42 = vpop.f32.mrb[21].mxu0 }
0x1212   :  { %v1430_v4 = vpop.f32.mrb[22].mxu0 }
0x1213   :  { %v1433_v43 = vmul.f32 %v2443_v41, %v2749_v27  ;;  %v2321_v20 = vpop.f32.mrb[23].mxu0 }
0x1215   :  { %v2023_v33 = vmul.f32 -1.442695, %v1433_v43 }
0x1217   :  { %2573 = vpow2.f32 %v2023_v33 }
0x121a   :  { %v2572_v44 = vpop.eup %2571 }
0x121b   :  { %v1326_v45 = vmul.f32 2.0, %v2572_v44 }
0x121d   :  { %v2020_v6 = vadd.f32 -1.0, %v1326_v45 }
0x121f   :  { %v1328_v46 = vsel %vm2740_vm3, %v2020_v6, %v2572_v44 }
0x1220   :  { %1331 = vrot.lane.b32.xlu0 %v1328_v46, %s2611_s22  ;;  %v1329_v59 = vmul.f32 %v1328_v46, %v3016_v8 }
0x1221   :  { %v2574_v48 = vpop.eup %2573 }
0x1222   :  { %v1437_v52 = vadd.f32 1.0, %v2574_v48 }
0x1224   :  { %2575 = vrcp.f32 %v1437_v52 }
0x122e   :  { %v2576_v37 = vpop.eup %2575 }
0x122f   :  { %v1440_v53 = vmul.f32 2.0, %v2576_v37 }
0x1231   :  { %v2024_v54 = vadd.f32 -1.0, %v1440_v53 }
0x1233   :  { %v1442_v55 = vsel %vm2740_vm3, %v2024_v54, %v2576_v37 }
0x1234   :  { %1445 = vrot.lane.b32.xlu1 %v1442_v55, %s2611_s22  ;;  %v1443_v21 = vmul.f32 %v1442_v55, %v3021_v12 }
0x1292   :  { %v1332_v56 = vpop.permute.xlu0 %1331 }
0x1293   :  { %v1334_v57 = vmul.f32 %v1332_v56, %v1328_v46 }
0x1295   :  { %1336 = vrot.lane.b32.xlu0 %v1334_v57, %s2612_s23 }
0x12a6   :  { %v1446_v25 = vpop.permute.xlu1 %1445 }
0x12a7   :  { %v1448_v58 = vmul.f32 %v1446_v25, %v1442_v55 }
0x12a9   :  { %1450 = vrot.lane.b32.xlu1 %v1448_v58, %s2612_s23 }
0x1307   :  { %v1337_v60 = vpop.permute.xlu0 %1336 }
0x1308   :  { %v3062_v61 = vadd.f32 %v1337_v60, %v1329_v59 }
0x130a   :  { %2577 = vtanh.f32 %v3062_v61 }
0x1314   :  { %v2578_v63 = vpop.eup %2577 }
0x1315   :  { %1342 = vrot.lane.b32.xlu0 %v2578_v63, %s2611_s22  ;;  %v2605_v63 = vld [vmem:[%s3208_s5 + $0x8] sm:$0xff]  }
0x131b   :  { %v1451_v0 = vpop.permute.xlu1 %1450 }
0x131c   :  { %v3067_v2 = vadd.f32 %v1451_v0, %v1443_v21 }
0x131e   :  { %2579 = vtanh.f32 %v3067_v2 }
0x1328   :  { %v2580_v3 = vpop.eup %2579 }
0x1329   :  { %1456 = vrot.lane.b32.xlu1 %v2580_v3, %s2611_s22 }
0x1387   :  { %v1343_v5 = vpop.permute.xlu0 %1342 }
0x1388   :  { %v1345_v7 = vmul.f32 %v1343_v5, %v1328_v46 }
0x138a   :  { %v1460_v8 = vpack.c.bf16 %v1345_v7, %v1345_v7 }
0x138c   :  { %1462 = vrot.lane.b32.xlu0 %v1460_v8, %s2612_s23 }
0x139b   :  { %v1457_v9 = vpop.permute.xlu1 %1456 }
0x139c   :  { %v1459_v10 = vmul.f32 %v1457_v9, %v1442_v55 }
0x139e   :  { %v1534_v11 = vpack.c.bf16 %v1459_v10, %v1459_v10 }
0x13a0   :  { %1576 = vrot.lane.b32.xlu1 %v1534_v11, %s2612_s23 }
0x13fe   :  { %v1463_v13 = vpop.permute.xlu0 %1462 }
0x13ff   :  { %2327 = vmatmul.mubr.msk.bf16.vlgmr.msra.gmra.mrb[36].mxu1 %vm229_vm4, %v1463_v13 }
0x1400   :  { %2331 = vmatpush3.bf16.msra.mxu1 %v2764_v47  ;;  %2334 = vmatprep.mubr.msk.bf16.mxu1 %vm2608_vm0, %v2607_v1 }
0x1401   :  { %2332 = vmatprep.subr.bf16.mxu1 %v2607_v1 }
0x1404   :  { %2333 = vmatpush3.bf16.msra.mxu1 %v2771_v49  ;;  %v2603_v49 = vld [vmem:[%s3206_s3] ss:$0 sm:$0xff] }
0x1405   :  { %2338 = vmatprep.subr.bf16.mxu1 %v2607_v1  ;;  %v210_v12 = vadd.f32 %v2603_v49, %v2932_v36 }
0x1407   :  { %2335 = vmatmul.mubr.msk.bf16.vlgmr.msra.gmra.mrb[40].mxu1 %vm229_vm4, %v1463_v13 }
0x1408   :  { %2339 = vmatpush3.bf16.msra.mxu1 %v2780_v50  ;;  %2342 = vmatprep.mubr.msk.bf16.mxu1 %vm2608_vm0, %v2607_v1 }
0x1409   :  { %2340 = vmatprep.subr.bf16.mxu1 %v2607_v1 }
0x140c   :  { %2341 = vmatpush3.bf16.msra.mxu1 %v2788_v51 }
0x1412   :  { %v1577_v47 = vpop.permute.xlu1 %1576 }
0x1413   :  { %2343 = vmatmul.mubr.msk.bf16.vlgmr.msra.gmra.mrb[40].mxu1 %vm229_vm4, %v1577_v47 }
0x1414   :  { %2370 = vmatprep.mubr.msk.f32.mxu1 %vm2608_vm0, %v2607_v1 }
0x14d2   :  { %v1501_v50 = vpop.f32.mrb[36].mxu1 }
0x14d3   :  { %v1502_v16 = vadd.f32 %v1501_v50, %v210_v12  ;;  %v2328_v15 = vpop.f32.mrb[37].mxu1 }
0x14d4   :  { %v1504_v17 = vpop.f32.mrb[38].mxu1 }
0x14d5   :  { %v1507_v19 = vmul.f32 %v1502_v16, %v2749_v27  ;;  %v2329_v24 = vpop.f32.mrb[39].mxu1 }
0x14d6   :  { %v1769_v24 = vld [vmem:[%s3210_s7] sm:$0xff] }
0x14d7   :  { %v2026_v51 = vmul.f32 -1.442695, %v1507_v19  ;;  %v2613_v19 = vmov 0.0|0.0  }
0x14d8   :  { %2408 = vmatprep.subr.bf16.mxu1 %v2613_v19 }
0x14d9   :  { %2581 = vpow2.f32 %v2026_v51  ;;  %v1771_v51 = vld [vmem:[%s3210_s7 + $0x10] sm:$0xff] }
0x14e3   :  { %v2582_v26 = vpop.eup %2581 }
0x14e4   :  { %v1511_v14 = vadd.f32 1.0, %v2582_v26  ;;  %v2409_v26 = vpack.c.bf16 %v1770_v22, %v1769_v24 }
0x14e6   :  { %2583 = vrcp.f32 %v1511_v14  ;;  %v1615_v23 = vpop.f32.mrb[40].mxu1  ;;  %v1772_v14 = vld [vmem:[%s3210_s7 + $0x18] sm:$0xff]  ;;  %2410 = vmatpush3.bf16.msra.mxu1 %v2409_v26 }
0x14e7   :  { %v2444_v28 = vadd.f32 %v2807_v62, %v1615_v23  ;;  %v2344_v29 = vpop.f32.mrb[41].mxu1  ;;  %v2412_v23 = vpack.c.bf16 %v1772_v14, %v1771_v51  ;;  %2411 = vmatprep.subr.bf16.mxu1 %v2613_v19 }
0x14e8   :  { %v1618_v31 = vpop.f32.mrb[42].mxu1  ;;  %v1858_v29 = vld [vmem:[%s3211_s9] sm:$0xff] }
0x14e9   :  { %v1621_v32 = vmul.f32 %v2444_v28, %v2749_v27  ;;  %v2345_v36 = vpop.f32.mrb[43].mxu1  ;;  %v1859_v31 = vld [vmem:[%s3211_s9 + $0x8] sm:$0xff] }
0x14ea   :  { %2413 = vmatpush3.bf16.msra.mxu1 %v2412_v23  ;;  %v2415_v36 = vpack.c.bf16 %v1859_v31, %v1858_v29 }
0x14eb   :  { %v2030_v30 = vmul.f32 -1.442695, %v1621_v32  ;;  %v1860_v32 = vld [vmem:[%s3211_s9 + $0x10] sm:$0xff] }
0x14ed   :  { %2585 = vpow2.f32 %v2030_v30  ;;  %v1861_v30 = vld [vmem:[%s3211_s9 + $0x18] sm:$0xff] }
0x14f0   :  { %v2584_v18 = vpop.eup %2583 }
0x14f1   :  { %v1514_v35 = vmul.f32 2.0, %v2584_v18 }
0x14f3   :  { %v2027_v38 = vadd.f32 -1.0, %v1514_v35  ;;  %v1862_v35 = vld [vmem:[%s3211_s9 + $0x20] sm:$0xff] }
0x14f5   :  { %v1516_v34 = vsel %vm2740_vm3, %v2027_v38, %v2584_v18  ;;  %v2418_v18 = vpack.c.bf16 %v1861_v30, %v1860_v32  ;;  %v1863_v38 = vld [vmem:[%s3211_s9 + $0x28] sm:$0xff] }
0x14f6   :  { %1519 = vrot.lane.b32.xlu0 %v1516_v34, %s2611_s22  ;;  %v1517_v45 = vmul.f32 %v1516_v34, %v3062_v61  ;;  %v2604_v61 = vld [vmem:[%s3208_s5] sm:$0xff]  }
0x14f7   :  { %v2586_v39 = vpop.eup %2585 }
0x14f8   :  { %v1625_v40 = vadd.f32 1.0, %v2586_v39  ;;  %v1864_v39 = vld [vmem:[%s3211_s9 + $0x30] sm:$0xff] }
0x14fa   :  { %2587 = vrcp.f32 %v1625_v40  ;;  %v1865_v40 = vld [vmem:[%s3211_s9 + $0x38] sm:$0xff] }
0x1504   :  { %v2588_v41 = vpop.eup %2587 }
0x1505   :  { %v1628_v62 = vmul.f32 2.0, %v2588_v41 }
0x1507   :  { %v2031_v42 = vadd.f32 -1.0, %v1628_v62 }
0x1509   :  { %v1630_v4 = vsel %vm2740_vm3, %v2031_v42, %v2588_v41  ;;  %v2424_v42 = vpack.c.bf16 %v1865_v40, %v1864_v39 }
0x150a   :  { %1633 = vrot.lane.b32.xlu1 %v1630_v4, %s2611_s22  ;;  %v1631_v52 = vmul.f32 %v1630_v4, %v3067_v2  ;;  %v2606_v2 = vld [vmem:[%s3209_s6] ss:$0 sm:$0xff] }
0x1568   :  { %v1520_v43 = vpop.permute.xlu0 %1519 }
0x1569   :  { %v1522_v20 = vmul.f32 %v1520_v43, %v1516_v34  ;;  %v1867_v43 = vld [vmem:[%s3211_s9 + $0x48] sm:$0xff] }
0x156b   :  { %1524 = vrot.lane.b32.xlu0 %v1522_v20, %s2612_s23 }
0x157c   :  { %v1634_v33 = vpop.permute.xlu1 %1633 }
0x157d   :  { %v1636_v44 = vmul.f32 %v1634_v33, %v1630_v4  ;;  %v1868_v33 = vld [vmem:[%s3211_s9 + $0x50] sm:$0xff] }
0x157f   :  { %1638 = vrot.lane.b32.xlu1 %v1636_v44, %s2612_s23  ;;  %v1869_v44 = vld [vmem:[%s3211_s9 + $0x58] sm:$0xff] }
0x15dd   :  { %v1525_v6 = vpop.permute.xlu0 %1524 }
0x15de   :  { %v1527_v46 = vadd.f32 %v1525_v6, %v1517_v45  ;;  %v2430_v45 = vpack.c.bf16 %v1869_v44, %v1868_v33  ;;  %v1870_v6 = vld [vmem:[%s3211_s9 + $0x60] sm:$0xff] }
0x15e0   :  { %2589 = vtanh.f32 %v1527_v46  ;;  %v1871_v46 = vld [vmem:[%s3211_s9 + $0x68] sm:$0xff] }
0x15ea   :  { %v2590_v48 = vpop.eup %2589 }
0x15eb   :  { %1530 = vrot.lane.b32.xlu0 %v2590_v48, %s2611_s22  ;;  %v2433_v48 = vpack.c.bf16 %v1871_v46, %v1870_v6 }
0x15f1   :  { %v1639_v37 = vpop.permute.xlu1 %1638 }
0x15f2   :  { %v1641_v53 = vadd.f32 %v1639_v37, %v1631_v52  ;;  %v1872_v37 = vld [vmem:[%s3211_s9 + $0x70] sm:$0xff] }
0x15f4   :  { %2591 = vtanh.f32 %v1641_v53 }
0x15fe   :  { %v2592_v54 = vpop.eup %2591 }
0x15ff   :  { %1644 = vrot.lane.b32.xlu1 %v2592_v54, %s2611_s22 }
0x165d   :  { %v1531_v55 = vpop.permute.xlu0 %1530 }
0x165e   :  { %v1533_v56 = vmul.f32 %v1531_v55, %v1516_v34  ;;  %v2421_v34 = vpack.c.bf16 %v1863_v38, %v1862_v35  ;;  %v2036_v55 = vld [vmem:[%s3212_s8] ss:$0 sm:$0xff] }
0x1660   :  { %v1649_v57 = vpack.c.bf16 %v1533_v56, %v1533_v56 }
0x1662   :  { %1651 = vrot.lane.b32.xlu0 %v1649_v57, %s2612_s23 }
0x1671   :  { %v1645_v25 = vpop.permute.xlu1 %1644 }
0x1672   :  { %v1647_v58 = vmul.f32 %v1645_v25, %v1630_v4  ;;  %v1866_v4 = vld [vmem:[%s3211_s9 + $0x40] sm:$0xff] }
0x1673   :  { %v2427_v20 = vpack.c.bf16 %v1867_v43, %v1866_v4 }
0x1674   :  { %v1648_v59 = vpack.c.bf16 %v1647_v58, %v1647_v58 }
0x1676   :  { %1697 = vrot.lane.b32.xlu1 %v1648_v59, %s2612_s23 }
0x16d4   :  { %v1652_v60 = vpop.permute.xlu0 %1651 }
0x16d5   :  { %2351 = vmatmul.mubr.msk.bf16.vlgmr.msra.gmra.mrb[24].mxu0 %vm229_vm4, %v1652_v60  ;;  %v2038_v60 = vld [vmem:[%s3213_s10] ss:$0 sm:$0xff] }
0x16d6   :  { %2355 = vmatpush3.bf16.msra.mxu0 %v2604_v61  ;;  %2358 = vmatprep.mubr.msk.bf16.mxu0 %vm2608_vm0, %v2607_v1 }
0x16d7   :  { %2356 = vmatprep.subr.bf16.mxu0 %v2607_v1 }
0x16da   :  { %2357 = vmatpush3.bf16.msra.mxu0 %v2605_v63 }
0x16db   :  { %2414 = vmatprep.subr.bf16.mxu0 %v2613_v19 }
0x16e8   :  { %v1698_v21 = vpop.permute.xlu1 %1697 }
0x16e9   :  { %2359 = vmatmul.mubr.msk.bf16.vlgmr.msra.gmra.mrb[24].mxu0 %vm229_vm4, %v1698_v21 }
0x16ea   :  { %2405 = vmatprep.mubr.msk.f32.mxu0 %vm2608_vm0, %v2607_v1  ;;  %2416 = vmatpush3.bf16.msra.mxu0 %v2415_v36 }
0x16eb   :  { %2417 = vmatprep.subr.bf16.mxu0 %v2613_v19 }
0x16ee   :  { %2419 = vmatpush3.bf16.msra.mxu0 %v2418_v18 }
0x16ef   :  { %2420 = vmatprep.subr.bf16.mxu0 %v2613_v19 }
0x16f2   :  { %2422 = vmatpush3.bf16.msra.mxu0 %v2421_v34 }
0x16f3   :  { %2423 = vmatprep.subr.bf16.mxu0 %v2613_v19 }
0x16f6   :  { %2425 = vmatpush3.bf16.msra.mxu0 %v2424_v42 }
0x16f7   :  { %2426 = vmatprep.subr.bf16.mxu0 %v2613_v19 }
0x16fa   :  { %2428 = vmatpush3.bf16.msra.mxu0 %v2427_v20 }
0x16fb   :  { %2429 = vmatprep.subr.bf16.mxu0 %v2613_v19 }
0x16fe   :  { %2431 = vmatpush3.bf16.msra.mxu0 %v2430_v45 }
0x16ff   :  { %2432 = vmatprep.subr.bf16.mxu0 %v2613_v19 }
0x1702   :  { %2434 = vmatpush3.bf16.msra.mxu0 %v2433_v48 }
0x1703   :  { %2435 = vmatprep.subr.bf16.mxu0 %v2613_v19 }
0x17bc   :  { %v1736_v0 = vpop.f32.mrb[24].mxu0 }
0x17bd   :  { %v2445_v3 = vadd.f32 %v2606_v2, %v1736_v0  ;;  %v2360_v5 = vpop.f32.mrb[25].mxu0 }
0x17be   :  { %v1739_v7 = vpop.f32.mrb[26].mxu0 }
0x17bf   :  { %v1742_v8 = vmul.f32 %v2445_v3, %v2749_v27  ;;  %v2361_v9 = vpop.f32.mrb[27].mxu0 }
0x17c1   :  { %v2034_v10 = vmul.f32 -1.442695, %v1742_v8 }
0x17c3   :  { %2593 = vpow2.f32 %v2034_v10 }
0x17cd   :  { %v2594_v11 = vpop.eup %2593 }
0x17ce   :  { %v1746_v13 = vadd.f32 1.0, %v2594_v11 }
0x17d0   :  { %2595 = vrcp.f32 %v1746_v13 }
0x17da   :  { %v2596_v47 = vpop.eup %2595 }
0x17db   :  { %v1749_v49 = vmul.f32 2.0, %v2596_v47 }
0x17dd   :  { %v2035_v12 = vadd.f32 -1.0, %v1749_v49 }
0x17df   :  { %v1751_v1 = vsel %vm2740_vm3, %v2035_v12, %v2596_v47 }
0x17e0   :  { %1754 = vrot.lane.b32.xlu0 %v1751_v1, %s2611_s22  ;;  %v1752_v15 = vmul.f32 %v1751_v1, %v1641_v53  ;;  %v1873_v53 = vld [vmem:[%s3211_s9 + $0x78] sm:$0xff] }
0x17e1   :  { %v2436_v54 = vpack.c.bf16 %v1873_v53, %v1872_v37 }
0x17e3   :  { %2437 = vmatpush3.bf16.msra.mxu0 %v2436_v54 }
0x1852   :  { %v1755_v50 = vpop.permute.xlu0 %1754 }
0x1853   :  { %v1757_v16 = vmul.f32 %v1755_v50, %v1751_v1 }
0x1855   :  { %1759 = vrot.lane.b32.xlu1 %v1757_v16, %s2612_s23 }
0x18c7   :  { %v1760_v27 = vpop.permute.xlu1 %1759 }
0x18c8   :  { %v1762_v17 = vadd.f32 %v1760_v27, %v1752_v15 }
0x18ca   :  { %2597 = vtanh.f32 %v1762_v17 }
0x18d4   :  { %v2598_v28 = vpop.eup %2597 }
0x18d5   :  { %1765 = vrot.lane.b32.xlu0 %v2598_v28, %s2611_s22 }
0x1947   :  { %v1766_v41 = vpop.permute.xlu0 %1765 }
0x1948   :  { %v1768_v62 = vmul.f32 %v1766_v41, %v1751_v1 }
0x194a   :  { %1781 = vrot.lane.b32.xlu1 %v1768_v62, %s2612_s23 }
0x19bc   :  { %v1782_v52 = vpop.permute.xlu1 %1781 }
0x19bd   :  { %2371 = vmatmul.mubr.msk.f32.vlgmr.msra.gmra.mrb[44].mxu1 %vm229_vm4, %v1782_v52 }
0x1a90   :  { %v1851_v56 = vpop.f32.mrb[44].mxu1 }
0x1a91   :  { %v1852_v57 = vadd.f32 %v2036_v55, %v1851_v56  ;;  %v2372_v25 = vpop.f32.mrb[45].mxu1 }
0x1a93   :  { %vm1855_vm5 = vcmp.ge.f32.partialorder %v1852_v57, 0.0  ;;  %v1856_v58 = vmul.f32 0.01, %v1852_v57 }
0x1a95   :  { %v1857_v59 = vsel %vm1855_vm5, %v1852_v57, %v1856_v58 }
0x1a96   :  { %2406 = vmatmul.mubr.f32.vlgmr.msra.gmra.mrb[28].mxu0 %v1857_v59 }
0x1b69   :  { %v1947_v61 = vpop.f32.mrb[28].mxu0 }
0x1b6a   :  { %v1948_v63 = vadd.f32 %v2038_v60, %v1947_v61  ;;  %v2407_v21 = vpop.f32.mrb[29].mxu0 }
0x1b6c   :  { %v2039_v0 = vmul.f32 -1.442695, %v1948_v63 }
0x1b6e   :  { %2599 = vpow2.f32 %v2039_v0 }
0x1b78   :  { %v2600_v2 = vpop.eup %2599 }
0x1b79   :  { %v1954_v3 = vadd.f32 1.0, %v2600_v2 }
0x1b7b   :  { %2601 = vrcp.f32 %v1954_v3 }
0x1b85   :  { %v2602_v5 = vpop.eup %2601 }
0x1b86   :  { %1957 = vst [vmem:[%s3214_s11] sm:$0xff] %v2602_v5 }

</bundles_post_ra>
